<compile_context>
chip_gen: v5e
topology: v5e:2x2
jax: 0.10.0
libtpu: 0.0.40
codegen_flags: <defaults>
</compile_context>

<pallas_src>
import math
from functools import partial

import jax
import jax.numpy as jnp
from jax import lax
from jax.experimental import pallas as pl
from jax.experimental.pallas import tpu as pltpu

EPS = 1e-5  # nn.LayerNorm default


def _layernorm(x, g, b):
    mu = jnp.mean(x, axis=-1, keepdims=True)
    var = jnp.mean((x - mu) ** 2, axis=-1, keepdims=True)
    return (x - mu) * lax.rsqrt(var + EPS) * g + b


def _gelu_exact(x):
    # nn.GELU() default (approximate='none'), erf-based.
    return 0.5 * x * (1.0 + lax.erf(x / math.sqrt(2.0)))


def _vmem_limit_bytes():
    # Generation-aware budget: ~75% of physical VMEM (v5e/v6e -> ~96 MB,
    # v7x -> ~48 MB).  Fallback if the query is unavailable.
    try:
        cap = pltpu.get_tpu_info().vmem_capacity_bytes
        return max(32 * 1024 * 1024, int(cap) * 3 // 4)
    except Exception:
        return 64 * 1024 * 1024


def _head_chunk(heads):
    for c in (4, 3, 2, 1):
        if heads % c == 0:
            return c
    return 1


def _round_up(a, m):
    return (a + m - 1) // m * m


# ----------------------------- Pallas kernels ------------------------------ #

def _blocks_kernel(x_ref, wqkv_ref, bqkv_ref, wo_ref, bo_ref,
                   g1_ref, b1_ref, wf1_ref, bf1_ref, wf2_ref, bf2_ref,
                   g2_ref, b2_ref, out_ref, attn_scr, *, heads, head_chunk):
    """One grid step = one transformer layer.  out_ref carries the residual
    stream (B, S, E) across the layer axis (VMEM-resident accumulator)."""
    l = pl.program_id(0)

    # Initialize the resident activation from the embedding input at layer 0.
    @pl.when(l == 0)
    def _():
        out_ref[...] = x_ref[...]

    B, S, E = out_ref.shape
    H = heads
    hd = E // H
    HC = head_chunk
    R = B * S

    x = out_ref[...]                              # (B, S, E) f32 residual stream
    xf = x.reshape(R, E)
    xb = xf.astype(jnp.bfloat16)

    # --- fused QKV projection over all rows: (B*S, E) @ (E, 3E), f32 accumulate.
    # The 1/sqrt(hd) scale is pre-folded into the q weight/bias at stack time.
    qkv = jnp.dot(xb, wqkv_ref[0], preferred_element_type=jnp.float32) + bqkv_ref[0]

    wo = wo_ref[0]                                # (H, hd, E) bf16, per-head split

    # Additive causal bias generated in-kernel (masked_fill(-1e20) semantics).
    rows = lax.broadcasted_iota(jnp.int32, (S, S), 0)
    cols = lax.broadcasted_iota(jnp.int32, (S, S), 1)
    causal = jnp.where(rows >= cols, 0.0, -1e20).astype(jnp.float32)

    def heads_view(block):                        # (S, HC*hd) -> (HC, S, hd) bf16
        return jnp.transpose(block.reshape(S, HC, hd), (1, 0, 2)).astype(jnp.bfloat16)

    # --- attention: per batch element, heads in chunks (bounds live scores to
    # (HC, S, S)).  TODO(synk): flash-style KV tiling for long S.
    for b in range(B):                            # static unroll
        qkv_b = qkv[b * S:(b + 1) * S]            # (S, 3E) f32
        o_b = jnp.zeros((S, E), jnp.float32)
        for h0 in range(0, H, HC):                # static unroll over head chunks
            c0 = h0 * hd
            q = heads_view(qkv_b[:, c0:c0 + HC * hd])
            k = heads_view(qkv_b[:, E + c0:E + c0 + HC * hd])
            v = heads_view(qkv_b[:, 2 * E + c0:2 * E + c0 + HC * hd])

            s = jnp.einsum('hqd,hkd->hqk', q, k,
                           preferred_element_type=jnp.float32) + causal[None]
            m = jnp.max(s, axis=-1, keepdims=True)
            e = jnp.exp(s - m)
            # approx reciprocal (EUP): ~1e-3 relative error in softmax rows.
            p = e * pl.reciprocal(jnp.sum(e, axis=-1, keepdims=True), approx=True)

            ctx = jnp.einsum('hqk,hkd->hqd', p.astype(jnp.bfloat16), v,
                             preferred_element_type=jnp.float32)      # (HC, S, hd)
            o_b = o_b + jnp.sum(
                jnp.einsum('hsd,hde->hse', ctx.astype(jnp.bfloat16),
                           wo[h0:h0 + HC], preferred_element_type=jnp.float32),
                axis=0)
        attn_scr[b] = o_b

    attn = attn_scr[...].reshape(R, E) + bo_ref[0]        # (B*S, E)

    # --- residual + LayerNorm, FFN on flattened rows (M = B*S), residual + LN.
    h1 = _layernorm(attn + xf, g1_ref[0], b1_ref[0])
    # TODO(synk): dropout treated as identity (eval mode).
    f = jnp.dot(h1.astype(jnp.bfloat16), wf1_ref[0],
                preferred_element_type=jnp.float32) + bf1_ref[0]
    f = _gelu_exact(f)
    f = jnp.dot(f.astype(jnp.bfloat16), wf2_ref[0],
                preferred_element_type=jnp.float32) + bf2_ref[0]
    h2 = _layernorm(f + h1, g2_ref[0], b2_ref[0])

    out_ref[...] = h2.reshape(B, S, E)


def _head_kernel(x_ref, g_ref, b_ref, w_ref, bo_ref, out_ref):
    """Final LayerNorm + LM head, tiled over (vocab tile, row tile)."""
    h = _layernorm(x_ref[...], g_ref[...], b_ref[...])                 # f32
    out_ref[...] = (jnp.dot(h.astype(jnp.bfloat16), w_ref[...],
                            preferred_element_type=jnp.float32) + bo_ref[...])


# ------------------------------- wrappers ---------------------------------- #

def stack_block_params(blocks, heads):
    """Stack per-layer params along a leading layer axis.

    * wq/wk/wv fused into (L, E, 3E) with 1/sqrt(hd) folded into the q slice.
    * wo pre-split per head: (L, H, hd, E).
    * matmul weights cast to bf16 (accuracy is bf16-class, not f32)."""
    E = blocks[0]["wq"].shape[0]
    hd = E // heads
    scale = 1.0 / math.sqrt(hd)

    wqkv, bqkv, wo = [], [], []
    rest = {k: [] for k in ("bo", "g1", "b1", "wf1", "bf1", "wf2", "bf2", "g2", "b2")}
    for blk in blocks:
        wqkv.append(jnp.concatenate([blk["wq"] * scale, blk["wk"], blk["wv"]], axis=1))
        bqkv.append(jnp.concatenate([blk["bq"] * scale, blk["bk"], blk["bv"]], axis=1))
        wo.append(blk["wo"].reshape(heads, hd, E))
        for k in rest:
            rest[k].append(blk[k])

    stacked = {
        "wqkv": jnp.stack(wqkv).astype(jnp.bfloat16),   # (L, E, 3E)
        "bqkv": jnp.stack(bqkv).astype(jnp.float32),    # (L, 1, 3E)
        "wo":   jnp.stack(wo).astype(jnp.bfloat16),     # (L, H, hd, E)
    }
    for k, lst in rest.items():
        arr = jnp.stack(lst)
        if k in ("wf1", "wf2"):
            arr = arr.astype(jnp.bfloat16)
        stacked[k] = arr
    return stacked


def run_blocks(x, stacked, heads):
    B, S, E = x.shape
    L = stacked["wqkv"].shape[0]
    HC = _head_chunk(heads)

    act_map = lambda l: (0, 0, 0)                 # resident activation across layers

    def wmap(ndim):
        if ndim == 3:
            return lambda l: (l, 0, 0)
        return lambda l: (l, 0, 0, 0)

    names = ("wqkv", "bqkv", "wo", "bo", "g1", "b1",
             "wf1", "bf1", "wf2", "bf2", "g2", "b2")
    in_specs = [pl.BlockSpec((B, S, E), act_map)]
    args = [x]
    for name in names:
        arr = stacked[name]
        in_specs.append(pl.BlockSpec((1,) + tuple(arr.shape[1:]), wmap(arr.ndim)))
        args.append(arr)

    return pl.pallas_call(
        partial(_blocks_kernel, heads=heads, head_chunk=HC),
        out_shape=jax.ShapeDtypeStruct((B, S, E), jnp.float32),
        grid=(L,),
        in_specs=in_specs,
        out_specs=pl.BlockSpec((B, S, E), act_map),
        scratch_shapes=[pltpu.VMEM((B, S, E), jnp.float32)],
        compiler_params=pltpu.CompilerParams(
            dimension_semantics=("arbitrary",),
            vmem_limit_bytes=_vmem_limit_bytes()),
    )(*args)


def run_head(x, params):
    B, S, E = x.shape
    V = params["w_out"].shape[1]
    R = B * S
    xr = x.reshape(R, E)

    # Rows padded to a multiple of 8, vocab to a multiple of 128 (lane-dense
    # tiles); no silent full-dimension fallback at real vocab sizes.
    tm = min(1024, _round_up(R, 8))
    R_pad = _round_up(R, tm)
    tn = min(1024, _round_up(V, 128))
    V_pad = _round_up(V, tn)

    xr_p = jnp.pad(xr, ((0, R_pad - R), (0, 0))) if R_pad != R else xr
    w = params["w_out"].astype(jnp.bfloat16)
    w_p = jnp.pad(w, ((0, 0), (0, V_pad - V))) if V_pad != V else w
    bo_p = (jnp.pad(params["b_out"], ((0, 0), (0, V_pad - V)))
            if V_pad != V else params["b_out"])

    # grid = (vocab tiles, row tiles): the weight block index (0, j) is constant
    # along the innermost (row) axis -> weight tile is not re-DMA'd per row tile.
    out = pl.pallas_call(
        _head_kernel,
        out_shape=jax.ShapeDtypeStruct((R_pad, V_pad), jnp.float32),
        grid=(V_pad // tn, R_pad // tm),
        in_specs=[
            pl.BlockSpec((tm, E), lambda j, i: (i, 0)),
            pl.BlockSpec((1, E), lambda j, i: (0, 0)),
            pl.BlockSpec((1, E), lambda j, i: (0, 0)),
            pl.BlockSpec((E, tn), lambda j, i: (0, j)),
            pl.BlockSpec((1, tn), lambda j, i: (0, j)),
        ],
        out_specs=pl.BlockSpec((tm, tn), lambda j, i: (i, j)),
        compiler_params=pltpu.CompilerParams(
            dimension_semantics=("parallel", "parallel"),
            vmem_limit_bytes=_vmem_limit_bytes()),
    )(xr_p, params["g_f"], params["b_f"], w_p, bo_p)
    return out[:R, :V].reshape(B, S, V)


def gpt_forward(tokens, params, heads):
    B, S = tokens.shape
    tok_e = jnp.take(params["tok_emb"], tokens, axis=0)      # (B, S, E) gather (plain JAX glue)
    pos_e = params["pos_emb"][:S][None, :, :]                 # (1, S, E)
    x = (tok_e + pos_e).astype(jnp.float32)                   # dropout = identity
    stacked = stack_block_params(params["blocks"], heads)
    x = run_blocks(x, stacked, heads)                          # all layers, one pallas_call
    return run_head(x, params)                                 # final LN + LM head


# -------------------------- params / reference ----------------------------- #

def init_gpt_params(key, vocab, E, ff, layers, max_len):
    n_keys = 4 + layers * 12
    keys = iter(jax.random.split(key, n_keys))

    def nrm(shape, s=0.02):
        return (s * jax.random.normal(next(keys), shape)).astype(jnp.float32)

    params = {
        "tok_emb": nrm((vocab, E)),
        "pos_emb": nrm((max_len, E)),
        "g_f": jnp.ones((1, E), jnp.float32),
        "b_f": jnp.zeros((1, E), jnp.float32),
        "w_out": nrm((E, vocab)),
        "b_out": nrm((1, vocab)),
        "blocks": [],
    }
    for _ in range(layers):
        blk = {
            "wq": nrm((E, E)), "bq": nrm((1, E)),
            "wk": nrm((E, E)), "bk": nrm((1, E)),
            "wv": nrm((E, E)), "bv": nrm((1, E)),
            "wo": nrm((E, E)), "bo": nrm((1, E)),
            "g1": jnp.ones((1, E), jnp.float32), "b1": jnp.zeros((1, E), jnp.float32),
            "wf1": nrm((E, ff)), "bf1": nrm((1, ff)),
            "wf2": nrm((ff, E)), "bf2": nrm((1, E)),
            "g2": jnp.ones((1, E), jnp.float32), "b2": jnp.zeros((1, E), jnp.float32),
        }
        params["blocks"].append(blk)
    return params


def ref_forward(tokens, params, heads):
    """Pure-jnp f32 reference mirroring the PyTorch forward (eval mode)."""
    B, S = tokens.shape
    E = params["tok_emb"].shape[1]
    hd = E // heads
    x = jnp.take(params["tok_emb"], tokens, axis=0) + params["pos_emb"][:S][None]
    mask = jnp.tril(jnp.ones((S, S), jnp.float32))
    for p in params["blocks"]:
        q = x @ p["wq"] + p["bq"]
        k = x @ p["wk"] + p["bk"]
        v = x @ p["wv"] + p["bv"]
        q = q.reshape(B, S, heads, hd).transpose(0, 2, 1, 3)
        k = k.reshape(B, S, heads, hd).transpose(0, 2, 1, 3)
        v = v.reshape(B, S, heads, hd).transpose(0, 2, 1, 3)
        att = (q @ jnp.swapaxes(k, -1, -2)) / math.sqrt(hd)
        att = jnp.where(mask[None, None] == 0.0, -1e20, att)
        att = jax.nn.softmax(att, axis=-1)
        o = (att @ v).transpose(0, 2, 1, 3).reshape(B, S, E)
        o = o @ p["wo"] + p["bo"]
        h1 = _layernorm(o + x, p["g1"], p["b1"])
        f = h1 @ p["wf1"] + p["bf1"]
        f = 0.5 * f * (1.0 + lax.erf(f / math.sqrt(2.0)))
        f = f @ p["wf2"] + p["bf2"]
        x = _layernorm(f + h1, p["g2"], p["b2"])
    x = _layernorm(x, params["g_f"], params["b_f"])
    return x @ params["w_out"] + params["b_out"]


# ---------------------------------- main ------------------------------------ #

if __name__ == "__main__":
    # Small shapes consistent with the module's forward.
    B, S = 2, 8
    VOCAB, EMBED, HEADS, FF_DIM, LAYERS, MAX_LEN = 64, 32, 4, 64, 2, 16

    key = jax.random.PRNGKey(0)
    k_par, k_tok = jax.random.split(key)
    params = init_gpt_params(k_par, VOCAB, EMBED, FF_DIM, LAYERS, MAX_LEN)
    tokens = jax.random.randint(k_tok, (B, S), 0, VOCAB, dtype=jnp.int32)

    logits = gpt_forward(tokens, params, HEADS)
    logits = jax.block_until_ready(logits)
    assert logits.shape == (B, S, VOCAB), logits.shape

    ref = jax.block_until_ready(ref_forward(tokens, params, HEADS))
    # bf16 matmul inputs (f32 accumulate) + approx softmax reciprocal vs f32
    # reference -> loosened tolerance.
    max_diff = float(jnp.max(jnp.abs(logits - ref)))
    assert jnp.allclose(logits, ref, atol=2e-2, rtol=2e-2), max_diff

    print("KERNEL_OK")
</pallas_src>

<mosaic_0001>
module attributes {stable_mosaic.version = 11 : i64} {
  func.func @_blocks_kernel(%arg0: i32, %arg1: memref<2x8x32xf32, #tpu.memory_space<vmem>>, %arg2: memref<1x32x96xbf16, #tpu.memory_space<vmem>>, %arg3: memref<1x1x96xf32, #tpu.memory_space<vmem>>, %arg4: memref<1x4x8x32xbf16, #tpu.memory_space<vmem>>, %arg5: memref<1x1x32xf32, #tpu.memory_space<vmem>>, %arg6: memref<1x1x32xf32, #tpu.memory_space<vmem>>, %arg7: memref<1x1x32xf32, #tpu.memory_space<vmem>>, %arg8: memref<1x32x64xbf16, #tpu.memory_space<vmem>>, %arg9: memref<1x1x64xf32, #tpu.memory_space<vmem>>, %arg10: memref<1x64x32xbf16, #tpu.memory_space<vmem>>, %arg11: memref<1x1x32xf32, #tpu.memory_space<vmem>>, %arg12: memref<1x1x32xf32, #tpu.memory_space<vmem>>, %arg13: memref<1x1x32xf32, #tpu.memory_space<vmem>>, %arg14: memref<2x8x32xf32, #tpu.memory_space<vmem>>, %arg15: memref<2x8x32xf32, #tpu.memory_space<vmem>>) attributes {dimension_semantics = [#tpu.dimension_semantics<arbitrary>], iteration_bounds = array<i64: 2>, scalar_prefetch = 0 : i64, scratch_operands = 1 : i64, tpu.core_type = #tpu.core_type<tc>, window_params = [{pipeline_mode = #tpu.pipeline_mode<synchronous>, transform_indices = @transform_0, window_bounds = array<i64: 2, 8, 32>}, {transform_indices = @transform_1, window_bounds = array<i64: 1, 32, 96>}, {transform_indices = @transform_2, window_bounds = array<i64: 1, 1, 96>}, {transform_indices = @transform_3, window_bounds = array<i64: 1, 4, 8, 32>}, {transform_indices = @transform_4, window_bounds = array<i64: 1, 1, 32>}, {transform_indices = @transform_5, window_bounds = array<i64: 1, 1, 32>}, {transform_indices = @transform_6, window_bounds = array<i64: 1, 1, 32>}, {transform_indices = @transform_7, window_bounds = array<i64: 1, 32, 64>}, {transform_indices = @transform_8, window_bounds = array<i64: 1, 1, 64>}, {transform_indices = @transform_9, window_bounds = array<i64: 1, 64, 32>}, {transform_indices = @transform_10, window_bounds = array<i64: 1, 1, 32>}, {transform_indices = @transform_11, window_bounds = array<i64: 1, 1, 32>}, {transform_indices = @transform_12, window_bounds = array<i64: 1, 1, 32>}, {pipeline_mode = #tpu.pipeline_mode<synchronous>, transform_indices = @transform_13, window_bounds = array<i64: 2, 8, 32>}]} {
    %c0_i32 = arith.constant 0 : i32
    %0 = arith.cmpi eq, %arg0, %c0_i32 : i32
    %1 = arith.extui %0 : i1 to i32
    %c0_i32_0 = arith.constant 0 : i32
    %2 = arith.cmpi ne, %1, %c0_i32_0 : i32
    scf.if %2 {
      %c0_82 = arith.constant 0 : index
      %c0_83 = arith.constant 0 : index
      %c0_84 = arith.constant 0 : index
      %181 = vector.load %arg1[%c0_82, %c0_83, %c0_84] : memref<2x8x32xf32, #tpu.memory_space<vmem>>, vector<2x8x32xf32>
      %c0_85 = arith.constant 0 : index
      %c0_86 = arith.constant 0 : index
      %c0_87 = arith.constant 0 : index
      %182 = vector.load %arg14[%c0_85, %c0_86, %c0_87] : memref<2x8x32xf32, #tpu.memory_space<vmem>>, vector<2x8x32xf32>
      tpu.vector_store %arg14[%c0_85, %c0_86, %c0_87], %181 {strides = array<i32>} : memref<2x8x32xf32, #tpu.memory_space<vmem>>, vector<2x8x32xf32>,
    } else {
    }
    %c0 = arith.constant 0 : index
    %c0_1 = arith.constant 0 : index
    %c0_2 = arith.constant 0 : index
    %3 = vector.load %arg14[%c0, %c0_1, %c0_2] : memref<2x8x32xf32, #tpu.memory_space<vmem>>, vector<2x8x32xf32>
    %4 = vector.shape_cast %3 : vector<2x8x32xf32> to vector<16x32xf32>
    %5 = arith.truncf %4 : vector<16x32xf32> to vector<16x32xbf16>
    %c0_3 = arith.constant 0 : index
    %c0_4 = arith.constant 0 : index
    %c0_5 = arith.constant 0 : index
    %6 = vector.load %arg2[%c0_3, %c0_4, %c0_5] : memref<1x32x96xbf16, #tpu.memory_space<vmem>>, vector<1x32x96xbf16>
    %7 = vector.shape_cast %6 : vector<1x32x96xbf16> to vector<32x96xbf16>
    %cst = arith.constant dense<0.000000e+00> : vector<16x96xf32>
    %8 = tpu.matmul %5, %7, %cst {dimension_numbers = #tpu.dot_dimension_numbers<[1], [0], [0], [1], [0, 0, 1, 1], [], []>} : vector<16x32xbf16>, vector<32x96xbf16>, vector<16x96xf32> -> vector<16x96xf32>
    %c0_6 = arith.constant 0 : index
    %c0_7 = arith.constant 0 : index
    %c0_8 = arith.constant 0 : index
    %9 = vector.load %arg3[%c0_6, %c0_7, %c0_8] : memref<1x1x96xf32, #tpu.memory_space<vmem>>, vector<1x1x96xf32>
    %10 = vector.shape_cast %9 : vector<1x1x96xf32> to vector<1x96xf32>
    %11 = vector.broadcast %10 : vector<1x96xf32> to vector<16x96xf32>
    %12 = arith.addf %8, %11 : vector<16x96xf32>
    %c0_9 = arith.constant 0 : index
    %c0_10 = arith.constant 0 : index
    %c0_11 = arith.constant 0 : index
    %c0_12 = arith.constant 0 : index
    %13 = vector.load %arg4[%c0_9, %c0_10, %c0_11, %c0_12] : memref<1x4x8x32xbf16, #tpu.memory_space<vmem>>, vector<1x4x8x32xbf16>
    %14 = vector.shape_cast %13 : vector<1x4x8x32xbf16> to vector<4x8x32xbf16>
    %15 = tpu.iota {dimensions = array<i32: 0>} : vector<8x8xi32>
    %16 = tpu.iota {dimensions = array<i32: 1>} : vector<8x8xi32>
    %17 = arith.cmpi sge, %15, %16 : vector<8x8xi32>
    %cst_13 = arith.constant 0.000000e+00 : f32
    %cst_14 = arith.constant -1.000000e+20 : f32
    %18 = vector.broadcast %cst_13 : f32 to vector<8x8xf32>
    %19 = vector.broadcast %cst_14 : f32 to vector<8x8xf32>
    %20 = arith.select %17, %18, %19 : vector<8x8xi1>, vector<8x8xf32>
    %21 = vector.extract_strided_slice %12 {offsets = [0, 0], sizes = [8, 96], strides = [1, 1]} : vector<16x96xf32> to vector<8x96xf32>
    %cst_15 = arith.constant 0.000000e+00 : f32
    %22 = vector.broadcast %cst_15 : f32 to vector<8x32xf32>
    %23 = vector.extract_strided_slice %21 {offsets = [0, 0], sizes = [8, 32], strides = [1, 1]} : vector<8x96xf32> to vector<8x32xf32>
    %24 = vector.shape_cast %23 : vector<8x32xf32> to vector<8x4x8xf32>
    %25 = tpu.transpose %24, [1, 0, 2] : vector<8x4x8xf32> -> vector<4x8x8xf32>
    %26 = arith.truncf %25 : vector<4x8x8xf32> to vector<4x8x8xbf16>
    %27 = vector.extract_strided_slice %21 {offsets = [0, 32], sizes = [8, 32], strides = [1, 1]} : vector<8x96xf32> to vector<8x32xf32>
    %28 = vector.shape_cast %27 : vector<8x32xf32> to vector<8x4x8xf32>
    %29 = tpu.transpose %28, [1, 0, 2] : vector<8x4x8xf32> -> vector<4x8x8xf32>
    %30 = arith.truncf %29 : vector<4x8x8xf32> to vector<4x8x8xbf16>
    %31 = vector.extract_strided_slice %21 {offsets = [0, 64], sizes = [8, 32], strides = [1, 1]} : vector<8x96xf32> to vector<8x32xf32>
    %32 = vector.shape_cast %31 : vector<8x32xf32> to vector<8x4x8xf32>
    %33 = tpu.transpose %32, [1, 0, 2] : vector<8x4x8xf32> -> vector<4x8x8xf32>
    %34 = arith.truncf %33 : vector<4x8x8xf32> to vector<4x8x8xbf16>
    "tpu.trace_start"() <{level = 10 : i32, message = "hqd,hkd->hqk"}> : () -> ()
    %cst_16 = arith.constant dense<0.000000e+00> : vector<4x8x8xf32>
    %35 = tpu.matmul %26, %30, %cst_16 {dimension_numbers = #tpu.dot_dimension_numbers<[2], [2], [1], [1], [0, 0, 0, 1, 1, 1], [0], [0]>} : vector<4x8x8xbf16>, vector<4x8x8xbf16>, vector<4x8x8xf32> -> vector<4x8x8xf32>
    "tpu.trace_stop"() : () -> ()
    %36 = vector.shape_cast %20 : vector<8x8xf32> to vector<1x8x8xf32>
    %37 = vector.broadcast %36 : vector<1x8x8xf32> to vector<4x8x8xf32>
    %38 = arith.addf %35, %37 : vector<4x8x8xf32>
    %cst_17 = arith.constant dense<0xFF800000> : vector<4x8xf32>
    %39 = vector.multi_reduction <maximumf>, %38, %cst_17 [2] : vector<4x8x8xf32> to vector<4x8xf32>
    %40 = vector.shape_cast %39 : vector<4x8xf32> to vector<4x8x1xf32>
    %41 = vector.broadcast %40 : vector<4x8x1xf32> to vector<4x8x8xf32>
    %42 = arith.subf %38, %41 : vector<4x8x8xf32>
    %43 = math.exp %42 : vector<4x8x8xf32>
    %cst_18 = arith.constant dense<0.000000e+00> : vector<4x8xf32>
    %44 = vector.multi_reduction <add>, %43, %cst_18 [2] : vector<4x8x8xf32> to vector<4x8xf32>
    %45 = vector.shape_cast %44 : vector<4x8xf32> to vector<4x8x1xf32>
    %46 = tpu.reciprocal %45 {approx = true} : vector<4x8x1xf32> -> vector<4x8x1xf32>
    %47 = vector.broadcast %46 : vector<4x8x1xf32> to vector<4x8x8xf32>
    %48 = arith.mulf %43, %47 : vector<4x8x8xf32>
    %49 = arith.truncf %48 : vector<4x8x8xf32> to vector<4x8x8xbf16>
    "tpu.trace_start"() <{level = 10 : i32, message = "hqk,hkd->hqd"}> : () -> ()
    %cst_19 = arith.constant dense<0.000000e+00> : vector<4x8x8xf32>
    %50 = tpu.matmul %49, %34, %cst_19 {dimension_numbers = #tpu.dot_dimension_numbers<[2], [1], [1], [2], [0, 0, 0, 1, 1, 2], [0], [0]>} : vector<4x8x8xbf16>, vector<4x8x8xbf16>, vector<4x8x8xf32> -> vector<4x8x8xf32>
    "tpu.trace_stop"() : () -> ()
    %51 = arith.truncf %50 : vector<4x8x8xf32> to vector<4x8x8xbf16>
    "tpu.trace_start"() <{level = 10 : i32, message = "hsd,hde->hse"}> : () -> ()
    %cst_20 = arith.constant dense<0.000000e+00> : vector<4x8x32xf32>
    %52 = tpu.matmul %51, %14, %cst_20 {dimension_numbers = #tpu.dot_dimension_numbers<[2], [1], [1], [2], [0, 0, 0, 1, 1, 2], [0], [0]>} : vector<4x8x8xbf16>, vector<4x8x32xbf16>, vector<4x8x32xf32> -> vector<4x8x32xf32>
    "tpu.trace_stop"() : () -> ()
    %cst_21 = arith.constant dense<0.000000e+00> : vector<8x32xf32>
    %53 = vector.multi_reduction <add>, %52, %cst_21 [0] : vector<4x8x32xf32> to vector<8x32xf32>
    %54 = arith.addf %22, %53 : vector<8x32xf32>
    %c0_22 = arith.constant 0 : index
    %c0_23 = arith.constant 0 : index
    %c0_24 = arith.constant 0 : index
    %55 = vector.load %arg15[%c0_22, %c0_23, %c0_24] : memref<2x8x32xf32, #tpu.memory_space<vmem>>, vector<1x8x32xf32>
    %56 = vector.shape_cast %55 : vector<1x8x32xf32> to vector<8x32xf32>
    %57 = vector.shape_cast %54 : vector<8x32xf32> to vector<1x8x32xf32>
    tpu.vector_store %arg15[%c0_22, %c0_23, %c0_24], %57 {strides = array<i32>} : memref<2x8x32xf32, #tpu.memory_space<vmem>>, vector<1x8x32xf32>,
    %58 = vector.extract_strided_slice %12 {offsets = [8, 0], sizes = [8, 96], strides = [1, 1]} : vector<16x96xf32> to vector<8x96xf32>
    %cst_25 = arith.constant 0.000000e+00 : f32
    %59 = vector.broadcast %cst_25 : f32 to vector<8x32xf32>
    %60 = vector.extract_strided_slice %58 {offsets = [0, 0], sizes = [8, 32], strides = [1, 1]} : vector<8x96xf32> to vector<8x32xf32>
    %61 = vector.shape_cast %60 : vector<8x32xf32> to vector<8x4x8xf32>
    %62 = tpu.transpose %61, [1, 0, 2] : vector<8x4x8xf32> -> vector<4x8x8xf32>
    %63 = arith.truncf %62 : vector<4x8x8xf32> to vector<4x8x8xbf16>
    %64 = vector.extract_strided_slice %58 {offsets = [0, 32], sizes = [8, 32], strides = [1, 1]} : vector<8x96xf32> to vector<8x32xf32>
    %65 = vector.shape_cast %64 : vector<8x32xf32> to vector<8x4x8xf32>
    %66 = tpu.transpose %65, [1, 0, 2] : vector<8x4x8xf32> -> vector<4x8x8xf32>
    %67 = arith.truncf %66 : vector<4x8x8xf32> to vector<4x8x8xbf16>
    %68 = vector.extract_strided_slice %58 {offsets = [0, 64], sizes = [8, 32], strides = [1, 1]} : vector<8x96xf32> to vector<8x32xf32>
    %69 = vector.shape_cast %68 : vector<8x32xf32> to vector<8x4x8xf32>
    %70 = tpu.transpose %69, [1, 0, 2] : vector<8x4x8xf32> -> vector<4x8x8xf32>
    %71 = arith.truncf %70 : vector<4x8x8xf32> to vector<4x8x8xbf16>
    "tpu.trace_start"() <{level = 10 : i32, message = "hqd,hkd->hqk"}> : () -> ()
    %cst_26 = arith.constant dense<0.000000e+00> : vector<4x8x8xf32>
    %72 = tpu.matmul %63, %67, %cst_26 {dimension_numbers = #tpu.dot_dimension_numbers<[2], [2], [1], [1], [0, 0, 0, 1, 1, 1], [0], [0]>} : vector<4x8x8xbf16>, vector<4x8x8xbf16>, vector<4x8x8xf32> -> vector<4x8x8xf32>
    "tpu.trace_stop"() : () -> ()
    %73 = vector.shape_cast %20 : vector<8x8xf32> to vector<1x8x8xf32>
    %74 = vector.broadcast %73 : vector<1x8x8xf32> to vector<4x8x8xf32>
    %75 = arith.addf %72, %74 : vector<4x8x8xf32>
    %cst_27 = arith.constant dense<0xFF800000> : vector<4x8xf32>
    %76 = vector.multi_reduction <maximumf>, %75, %cst_27 [2] : vector<4x8x8xf32> to vector<4x8xf32>
    %77 = vector.shape_cast %76 : vector<4x8xf32> to vector<4x8x1xf32>
    %78 = vector.broadcast %77 : vector<4x8x1xf32> to vector<4x8x8xf32>
    %79 = arith.subf %75, %78 : vector<4x8x8xf32>
    %80 = math.exp %79 : vector<4x8x8xf32>
    %cst_28 = arith.constant dense<0.000000e+00> : vector<4x8xf32>
    %81 = vector.multi_reduction <add>, %80, %cst_28 [2] : vector<4x8x8xf32> to vector<4x8xf32>
    %82 = vector.shape_cast %81 : vector<4x8xf32> to vector<4x8x1xf32>
    %83 = tpu.reciprocal %82 {approx = true} : vector<4x8x1xf32> -> vector<4x8x1xf32>
    %84 = vector.broadcast %83 : vector<4x8x1xf32> to vector<4x8x8xf32>
    %85 = arith.mulf %80, %84 : vector<4x8x8xf32>
    %86 = arith.truncf %85 : vector<4x8x8xf32> to vector<4x8x8xbf16>
    "tpu.trace_start"() <{level = 10 : i32, message = "hqk,hkd->hqd"}> : () -> ()
    %cst_29 = arith.constant dense<0.000000e+00> : vector<4x8x8xf32>
    %87 = tpu.matmul %86, %71, %cst_29 {dimension_numbers = #tpu.dot_dimension_numbers<[2], [1], [1], [2], [0, 0, 0, 1, 1, 2], [0], [0]>} : vector<4x8x8xbf16>, vector<4x8x8xbf16>, vector<4x8x8xf32> -> vector<4x8x8xf32>
    "tpu.trace_stop"() : () -> ()
    %88 = arith.truncf %87 : vector<4x8x8xf32> to vector<4x8x8xbf16>
    "tpu.trace_start"() <{level = 10 : i32, message = "hsd,hde->hse"}> : () -> ()
    %cst_30 = arith.constant dense<0.000000e+00> : vector<4x8x32xf32>
    %89 = tpu.matmul %88, %14, %cst_30 {dimension_numbers = #tpu.dot_dimension_numbers<[2], [1], [1], [2], [0, 0, 0, 1, 1, 2], [0], [0]>} : vector<4x8x8xbf16>, vector<4x8x32xbf16>, vector<4x8x32xf32> -> vector<4x8x32xf32>
    "tpu.trace_stop"() : () -> ()
    %cst_31 = arith.constant dense<0.000000e+00> : vector<8x32xf32>
    %90 = vector.multi_reduction <add>, %89, %cst_31 [0] : vector<4x8x32xf32> to vector<8x32xf32>
    %91 = arith.addf %59, %90 : vector<8x32xf32>
    %c1 = arith.constant 1 : index
    %c0_32 = arith.constant 0 : index
    %c0_33 = arith.constant 0 : index
    %92 = vector.load %arg15[%c1, %c0_32, %c0_33] : memref<2x8x32xf32, #tpu.memory_space<vmem>>, vector<1x8x32xf32>
    %93 = vector.shape_cast %92 : vector<1x8x32xf32> to vector<8x32xf32>
    %94 = vector.shape_cast %91 : vector<8x32xf32> to vector<1x8x32xf32>
    tpu.vector_store %arg15[%c1, %c0_32, %c0_33], %94 {strides = array<i32>} : memref<2x8x32xf32, #tpu.memory_space<vmem>>, vector<1x8x32xf32>,
    %c0_34 = arith.constant 0 : index
    %c0_35 = arith.constant 0 : index
    %c0_36 = arith.constant 0 : index
    %95 = vector.load %arg15[%c0_34, %c0_35, %c0_36] : memref<2x8x32xf32, #tpu.memory_space<vmem>>, vector<2x8x32xf32>
    %96 = vector.shape_cast %95 : vector<2x8x32xf32> to vector<16x32xf32>
    %c0_37 = arith.constant 0 : index
    %c0_38 = arith.constant 0 : index
    %c0_39 = arith.constant 0 : index
    %97 = vector.load %arg5[%c0_37, %c0_38, %c0_39] : memref<1x1x32xf32, #tpu.memory_space<vmem>>, vector<1x1x32xf32>
    %98 = vector.shape_cast %97 : vector<1x1x32xf32> to vector<1x32xf32>
    %99 = vector.broadcast %98 : vector<1x32xf32> to vector<16x32xf32>
    %100 = arith.addf %96, %99 : vector<16x32xf32>
    %101 = arith.addf %100, %4 : vector<16x32xf32>
    %c0_40 = arith.constant 0 : index
    %c0_41 = arith.constant 0 : index
    %c0_42 = arith.constant 0 : index
    %102 = vector.load %arg6[%c0_40, %c0_41, %c0_42] : memref<1x1x32xf32, #tpu.memory_space<vmem>>, vector<1x1x32xf32>
    %103 = vector.shape_cast %102 : vector<1x1x32xf32> to vector<1x32xf32>
    %c0_43 = arith.constant 0 : index
    %c0_44 = arith.constant 0 : index
    %c0_45 = arith.constant 0 : index
    %104 = vector.load %arg7[%c0_43, %c0_44, %c0_45] : memref<1x1x32xf32, #tpu.memory_space<vmem>>, vector<1x1x32xf32>
    %105 = vector.shape_cast %104 : vector<1x1x32xf32> to vector<1x32xf32>
    %cst_46 = arith.constant dense<0.000000e+00> : vector<16xf32>
    %106 = vector.multi_reduction <add>, %101, %cst_46 [1] : vector<16x32xf32> to vector<16xf32>
    %107 = vector.shape_cast %106 : vector<16xf32> to vector<16x1xf32>
    %cst_47 = arith.constant 3.200000e+01 : f32
    %108 = vector.broadcast %cst_47 : f32 to vector<16x1xf32>
    %109 = arith.divf %107, %108 : vector<16x1xf32>
    %110 = vector.broadcast %109 : vector<16x1xf32> to vector<16x32xf32>
    %111 = arith.subf %101, %110 : vector<16x32xf32>
    %112 = arith.mulf %111, %111 : vector<16x32xf32>
    %cst_48 = arith.constant dense<0.000000e+00> : vector<16xf32>
    %113 = vector.multi_reduction <add>, %112, %cst_48 [1] : vector<16x32xf32> to vector<16xf32>
    %114 = vector.shape_cast %113 : vector<16xf32> to vector<16x1xf32>
    %cst_49 = arith.constant 3.200000e+01 : f32
    %115 = vector.broadcast %cst_49 : f32 to vector<16x1xf32>
    %116 = arith.divf %114, %115 : vector<16x1xf32>
    %117 = vector.broadcast %109 : vector<16x1xf32> to vector<16x32xf32>
    %118 = arith.subf %101, %117 : vector<16x32xf32>
    %cst_50 = arith.constant 9.99999974E-6 : f32
    %119 = vector.broadcast %cst_50 : f32 to vector<16x1xf32>
    %120 = arith.addf %116, %119 : vector<16x1xf32>
    %121 = math.rsqrt %120 : vector<16x1xf32>
    %122 = vector.broadcast %121 : vector<16x1xf32> to vector<16x32xf32>
    %123 = arith.mulf %118, %122 : vector<16x32xf32>
    %124 = vector.broadcast %103 : vector<1x32xf32> to vector<16x32xf32>
    %125 = arith.mulf %123, %124 : vector<16x32xf32>
    %126 = vector.broadcast %105 : vector<1x32xf32> to vector<16x32xf32>
    %127 = arith.addf %125, %126 : vector<16x32xf32>
    %128 = arith.truncf %127 : vector<16x32xf32> to vector<16x32xbf16>
    %c0_51 = arith.constant 0 : index
    %c0_52 = arith.constant 0 : index
    %c0_53 = arith.constant 0 : index
    %129 = vector.load %arg8[%c0_51, %c0_52, %c0_53] : memref<1x32x64xbf16, #tpu.memory_space<vmem>>, vector<1x32x64xbf16>
    %130 = vector.shape_cast %129 : vector<1x32x64xbf16> to vector<32x64xbf16>
    %cst_54 = arith.constant dense<0.000000e+00> : vector<16x64xf32>
    %131 = tpu.matmul %128, %130, %cst_54 {dimension_numbers = #tpu.dot_dimension_numbers<[1], [0], [0], [1], [0, 0, 1, 1], [], []>} : vector<16x32xbf16>, vector<32x64xbf16>, vector<16x64xf32> -> vector<16x64xf32>
    %c0_55 = arith.constant 0 : index
    %c0_56 = arith.constant 0 : index
    %c0_57 = arith.constant 0 : index
    %132 = vector.load %arg9[%c0_55, %c0_56, %c0_57] : memref<1x1x64xf32, #tpu.memory_space<vmem>>, vector<1x1x64xf32>
    %133 = vector.shape_cast %132 : vector<1x1x64xf32> to vector<1x64xf32>
    %134 = vector.broadcast %133 : vector<1x64xf32> to vector<16x64xf32>
    %135 = arith.addf %131, %134 : vector<16x64xf32>
    %cst_58 = arith.constant 5.000000e-01 : f32
    %136 = vector.broadcast %cst_58 : f32 to vector<16x64xf32>
    %137 = arith.mulf %136, %135 : vector<16x64xf32>
    %cst_59 = arith.constant 1.41421354 : f32
    %138 = vector.broadcast %cst_59 : f32 to vector<16x64xf32>
    %139 = arith.divf %135, %138 : vector<16x64xf32>
    %140 = math.erf %139 : vector<16x64xf32>
    %cst_60 = arith.constant 1.000000e+00 : f32
    %141 = vector.broadcast %cst_60 : f32 to vector<16x64xf32>
    %142 = arith.addf %141, %140 : vector<16x64xf32>
    %143 = arith.mulf %137, %142 : vector<16x64xf32>
    %144 = arith.truncf %143 : vector<16x64xf32> to vector<16x64xbf16>
    %c0_61 = arith.constant 0 : index
    %c0_62 = arith.constant 0 : index
    %c0_63 = arith.constant 0 : index
    %145 = vector.load %arg10[%c0_61, %c0_62, %c0_63] : memref<1x64x32xbf16, #tpu.memory_space<vmem>>, vector<1x64x32xbf16>
    %146 = vector.shape_cast %145 : vector<1x64x32xbf16> to vector<64x32xbf16>
    %cst_64 = arith.constant dense<0.000000e+00> : vector<16x32xf32>
    %147 = tpu.matmul %144, %146, %cst_64 {dimension_numbers = #tpu.dot_dimension_numbers<[1], [0], [0], [1], [0, 0, 1, 1], [], []>} : vector<16x64xbf16>, vector<64x32xbf16>, vector<16x32xf32> -> vector<16x32xf32>
    %c0_65 = arith.constant 0 : index
    %c0_66 = arith.constant 0 : index
    %c0_67 = arith.constant 0 : index
    %148 = vector.load %arg11[%c0_65, %c0_66, %c0_67] : memref<1x1x32xf32, #tpu.memory_space<vmem>>, vector<1x1x32xf32>
    %149 = vector.shape_cast %148 : vector<1x1x32xf32> to vector<1x32xf32>
    %150 = vector.broadcast %149 : vector<1x32xf32> to vector<16x32xf32>
    %151 = arith.addf %147, %150 : vector<16x32xf32>
    %152 = arith.addf %151, %127 : vector<16x32xf32>
    %c0_68 = arith.constant 0 : index
    %c0_69 = arith.constant 0 : index
    %c0_70 = arith.constant 0 : index
    %153 = vector.load %arg12[%c0_68, %c0_69, %c0_70] : memref<1x1x32xf32, #tpu.memory_space<vmem>>, vector<1x1x32xf32>
    %154 = vector.shape_cast %153 : vector<1x1x32xf32> to vector<1x32xf32>
    %c0_71 = arith.constant 0 : index
    %c0_72 = arith.constant 0 : index
    %c0_73 = arith.constant 0 : index
    %155 = vector.load %arg13[%c0_71, %c0_72, %c0_73] : memref<1x1x32xf32, #tpu.memory_space<vmem>>, vector<1x1x32xf32>
    %156 = vector.shape_cast %155 : vector<1x1x32xf32> to vector<1x32xf32>
    %cst_74 = arith.constant dense<0.000000e+00> : vector<16xf32>
    %157 = vector.multi_reduction <add>, %152, %cst_74 [1] : vector<16x32xf32> to vector<16xf32>
    %158 = vector.shape_cast %157 : vector<16xf32> to vector<16x1xf32>
    %cst_75 = arith.constant 3.200000e+01 : f32
    %159 = vector.broadcast %cst_75 : f32 to vector<16x1xf32>
    %160 = arith.divf %158, %159 : vector<16x1xf32>
    %161 = vector.broadcast %160 : vector<16x1xf32> to vector<16x32xf32>
    %162 = arith.subf %152, %161 : vector<16x32xf32>
    %163 = arith.mulf %162, %162 : vector<16x32xf32>
    %cst_76 = arith.constant dense<0.000000e+00> : vector<16xf32>
    %164 = vector.multi_reduction <add>, %163, %cst_76 [1] : vector<16x32xf32> to vector<16xf32>
    %165 = vector.shape_cast %164 : vector<16xf32> to vector<16x1xf32>
    %cst_77 = arith.constant 3.200000e+01 : f32
    %166 = vector.broadcast %cst_77 : f32 to vector<16x1xf32>
    %167 = arith.divf %165, %166 : vector<16x1xf32>
    %168 = vector.broadcast %160 : vector<16x1xf32> to vector<16x32xf32>
    %169 = arith.subf %152, %168 : vector<16x32xf32>
    %cst_78 = arith.constant 9.99999974E-6 : f32
    %170 = vector.broadcast %cst_78 : f32 to vector<16x1xf32>
    %171 = arith.addf %167, %170 : vector<16x1xf32>
    %172 = math.rsqrt %171 : vector<16x1xf32>
    %173 = vector.broadcast %172 : vector<16x1xf32> to vector<16x32xf32>
    %174 = arith.mulf %169, %173 : vector<16x32xf32>
    %175 = vector.broadcast %154 : vector<1x32xf32> to vector<16x32xf32>
    %176 = arith.mulf %174, %175 : vector<16x32xf32>
    %177 = vector.broadcast %156 : vector<1x32xf32> to vector<16x32xf32>
    %178 = arith.addf %176, %177 : vector<16x32xf32>
    %179 = vector.shape_cast %178 : vector<16x32xf32> to vector<2x8x32xf32>
    %c0_79 = arith.constant 0 : index
    %c0_80 = arith.constant 0 : index
    %c0_81 = arith.constant 0 : index
    %180 = vector.load %arg14[%c0_79, %c0_80, %c0_81] : memref<2x8x32xf32, #tpu.memory_space<vmem>>, vector<2x8x32xf32>
    tpu.vector_store %arg14[%c0_79, %c0_80, %c0_81], %179 {strides = array<i32>} : memref<2x8x32xf32, #tpu.memory_space<vmem>>, vector<2x8x32xf32>,
    return
  }
  func.func @transform_0(%arg0: i32) -> (i32, i32, i32) {
    %c0_i32 = arith.constant 0 : i32
    %c0_i32_0 = arith.constant 0 : i32
    %c0_i32_1 = arith.constant 0 : i32
    %c0_i32_2 = arith.constant 0 : i32
    return %c0_i32, %c0_i32_0, %c0_i32_1 : i32, i32, i32
  }
  func.func @transform_1(%arg0: i32) -> (i32, i32, i32) {
    %c0_i32 = arith.constant 0 : i32
    %c0_i32_0 = arith.constant 0 : i32
    %c0_i32_1 = arith.constant 0 : i32
    return %arg0, %c0_i32, %c0_i32_0 : i32, i32, i32
  }
  func.func @transform_2(%arg0: i32) -> (i32, i32, i32) {
    %c0_i32 = arith.constant 0 : i32
    %c0_i32_0 = arith.constant 0 : i32
    %c0_i32_1 = arith.constant 0 : i32
    return %arg0, %c0_i32, %c0_i32_0 : i32, i32, i32
  }
  func.func @transform_3(%arg0: i32) -> (i32, i32, i32, i32) {
    %c0_i32 = arith.constant 0 : i32
    %c0_i32_0 = arith.constant 0 : i32
    %c0_i32_1 = arith.constant 0 : i32
    %c0_i32_2 = arith.constant 0 : i32
    return %arg0, %c0_i32, %c0_i32_0, %c0_i32_1 : i32, i32, i32, i32
  }
  func.func @transform_4(%arg0: i32) -> (i32, i32, i32) {
    %c0_i32 = arith.constant 0 : i32
    %c0_i32_0 = arith.constant 0 : i32
    %c0_i32_1 = arith.constant 0 : i32
    return %arg0, %c0_i32, %c0_i32_0 : i32, i32, i32
  }
  func.func @transform_5(%arg0: i32) -> (i32, i32, i32) {
    %c0_i32 = arith.constant 0 : i32
    %c0_i32_0 = arith.constant 0 : i32
    %c0_i32_1 = arith.constant 0 : i32
    return %arg0, %c0_i32, %c0_i32_0 : i32, i32, i32
  }
  func.func @transform_6(%arg0: i32) -> (i32, i32, i32) {
    %c0_i32 = arith.constant 0 : i32
    %c0_i32_0 = arith.constant 0 : i32
    %c0_i32_1 = arith.constant 0 : i32
    return %arg0, %c0_i32, %c0_i32_0 : i32, i32, i32
  }
  func.func @transform_7(%arg0: i32) -> (i32, i32, i32) {
    %c0_i32 = arith.constant 0 : i32
    %c0_i32_0 = arith.constant 0 : i32
    %c0_i32_1 = arith.constant 0 : i32
    return %arg0, %c0_i32, %c0_i32_0 : i32, i32, i32
  }
  func.func @transform_8(%arg0: i32) -> (i32, i32, i32) {
    %c0_i32 = arith.constant 0 : i32
    %c0_i32_0 = arith.constant 0 : i32
    %c0_i32_1 = arith.constant 0 : i32
    return %arg0, %c0_i32, %c0_i32_0 : i32, i32, i32
  }
  func.func @transform_9(%arg0: i32) -> (i32, i32, i32) {
    %c0_i32 = arith.constant 0 : i32
    %c0_i32_0 = arith.constant 0 : i32
    %c0_i32_1 = arith.constant 0 : i32
    return %arg0, %c0_i32, %c0_i32_0 : i32, i32, i32
  }
  func.func @transform_10(%arg0: i32) -> (i32, i32, i32) {
    %c0_i32 = arith.constant 0 : i32
    %c0_i32_0 = arith.constant 0 : i32
    %c0_i32_1 = arith.constant 0 : i32
    return %arg0, %c0_i32, %c0_i32_0 : i32, i32, i32
  }
  func.func @transform_11(%arg0: i32) -> (i32, i32, i32) {
    %c0_i32 = arith.constant 0 : i32
    %c0_i32_0 = arith.constant 0 : i32
    %c0_i32_1 = arith.constant 0 : i32
    return %arg0, %c0_i32, %c0_i32_0 : i32, i32, i32
  }
  func.func @transform_12(%arg0: i32) -> (i32, i32, i32) {
    %c0_i32 = arith.constant 0 : i32
    %c0_i32_0 = arith.constant 0 : i32
    %c0_i32_1 = arith.constant 0 : i32
    return %arg0, %c0_i32, %c0_i32_0 : i32, i32, i32
  }
  func.func @transform_13(%arg0: i32) -> (i32, i32, i32) {
    %c0_i32 = arith.constant 0 : i32
    %c0_i32_0 = arith.constant 0 : i32
    %c0_i32_1 = arith.constant 0 : i32
    %c0_i32_2 = arith.constant 0 : i32
    return %c0_i32, %c0_i32_0, %c0_i32_1 : i32, i32, i32
  }
}

</mosaic_0001>

<bundles_post_ra>
// kernel: tpu_custom_call.1
= control target key start
LH: loop header
LB: loop body
LE: loop exit
PB: predicated region body
PF: predicated region fallthrough
CT: control target
= control target key end

     0   :  { %s3858_s0 = inlined_call_operand.hbm [shape: f32[2,8,32], index: 0, kind: input, shape index: {}]   ;;  %s3859_s1 = inlined_call_operand.vmem [shape: bf16[2,32,96], index: 1, kind: input, shape index: {}]   ;;  %s3860_s2 = inlined_call_operand.hbm [shape: f32[2,1,96], index: 2, kind: input, shape index: {}]   ;;  %s3861_s3 = inlined_call_operand.vmem [shape: bf16[2,4,8,32], index: 3, kind: input, shape index: {}]   ;;  %s3862_s4 = inlined_call_operand.vmem [shape: f32[2,1,32], index: 4, kind: input, shape index: {}]   ;;  %s3863_s5 = inlined_call_operand.hbm [shape: f32[2,1,32], index: 5, kind: input, shape index: {}]   ;;  %s3864_s6 = inlined_call_operand.vmem [shape: f32[2,1,32], index: 6, kind: input, shape index: {}]   ;;  %s3865_s7 = inlined_call_operand.vmem [shape: bf16[2,32,64], index: 7, kind: input, shape index: {}]   ;;  %s3866_s8 = inlined_call_operand.vmem [shape: f32[2,1,64], index: 8, kind: input, shape index: {}]   ;;  %s3867_s9 = inlined_call_operand.vmem [shape: bf16[2,64,32], index: 9, kind: input, shape index: {}]   ;;  %s3868_s10 = inlined_call_operand.vmem [shape: f32[2,1,32], index: 10, kind: input, shape index: {}]   ;;  %s3869_s11 = inlined_call_operand.hbm [shape: f32[2,1,32], index: 11, kind: input, shape index: {}]   ;;  %s3870_s12 = inlined_call_operand.vmem [shape: f32[2,1,32], index: 12, kind: input, shape index: {}]   ;;  %s3871_s13 = inlined_call_operand.hbm [shape: f32[2,8,32], index: 13, kind: output, shape index: {}]  }
   0x1   :  { %3875 = sst [smem:[#allocation19_spill]] %s3858_s0 }
   0x2   :  { %3876 = sst [smem:[#allocation20_spill]] %s3859_s1 }
   0x3   :  { %3877 = sst [smem:[#allocation21_spill]] %s3860_s2 }
   0x4   :  { %3878 = sst [smem:[#allocation22_spill]] %s3861_s3 }
   0x5   :  { %3879 = sst [smem:[#allocation23_spill]] %s3868_s10 }
   0x6   :  { %3880 = sst [smem:[#allocation24_spill]] %s3870_s12 }
   0x7   :  { %3881 = sst [smem:[#allocation25_spill]] %s3871_s13 }
   0x8   :  { %18 = vsyncpa [#allocation4], 0 }
   0x9   :  { %19 = vsyncpa [#allocation7], 0 }
   0xa   :  { %21 = vsyncpa [#allocation7 + $0x1], 0 }
   0xb   :  { %22 = vsyncpa [#allocation10], 0 }
   0xc   :  { %24 = vsyncpa [#allocation10 + $0x1], 0 }
   0xd   :  { %25 = vsyncpa [#allocation5], 0  ;;  %s3130_s25 = smov 0   ;;  %s3132_s26 = smov 0  }
   0xe   :  { %s3134_s27 = smov 0   ;;  %s3136_s28 = smov 0  }
   0xf LB: > { %3882 = sst [smem:[#allocation16_spill]] %s3038_s27  ;;  %s3151_s29 = sadd.s32 1, %s3042_s28   ;;  %s3042_s28 = sphi %s3136_s28, %s3902_s28   ;;  %s3038_s27 = sphi %s3134_s27, %s3904_s27   ;;  %s3034_s26 = sphi %s3132_s26, %s3906_s26   ;;  %s3030_s25 = sphi %s3130_s25, %s3905_s25  }
  0x10   : > { %3883 = sst [smem:[#allocation17_spill]] %s3151_s29  ;;  %s85_s30 = sadd.s32 1, %s3038_s27 }
  0x11   : > { %s82_s14 = ssub.s32 %s3042_s28, %s3151_s29  ;;  %p92_p0 = scmp.ne.s32.totalorder %s3038_s27, %s3034_s26 }
  0x12   : > { %p83_p1 = scmp.eq.s32.totalorder %s82_s14, 0  ;;  %p93_p2 = scmp.eq.s32.totalorder %s3042_s28, 0 }
  0x13   : > { %p98_p3 = scmp.ne.s32.totalorder %s3034_s26, %s3030_s25  ;;  %p2698_p5 = scmp.lt.s32.totalorder %s3042_s28, 2 }
  0x14   : > { %s3162_s15 = scalar_select %p83_p1, %s3038_s27, %s85_s30  }
  0x15   : > { %p94_p4 = por %p93_p2, %p92_p0  ;;  %s425_s16 = sand.u32 1, %s3042_s28  }
  0x16   : > { %3884 = sst [smem:[#allocation18_spill]] %s3162_s15  ;;  %s3167_s17 = sand.u32 1, %s3038_s27  }
  0x17   : > { %s3885_s2 = sld [smem:[#allocation21_spill]]  ;;  %s428_s21 = scalar_lea.vmem [#allocation6], %s3167_s17 }
  0x18   : > { %s435_s22 = sshll.u32 %s428_s21, 4  ;;  %p3174_p6 = pnand %p2698_p5, %p94_p4  ;;  %s436_s22 = int_to_ptr.vmem [resolvable:$true] %s435_s22 }
  0x19   : > { %s3179_s30 = sadd.s32 4294967295, %s3042_s28   ;;  %p2578_p7 = scmp.ge.s32.totalorder %s3042_s28, 1 }
  0x1a   : > { %p99_p8 = scmp.eq.s32.totalorder %s3179_s30, 0  ;;  %s3183_s14 = scalar_lea.sflag [#allocation7], %s425_s16 }
  0x1b   : > { %p2852_p10 = pneg %p3174_p6 }
  0x1d   : > { %s431_s20 = scalar_lea.hbm %s3885_s2, %s3042_s28  ;;  %s2855_s15 = scalar_lea.hbm %s3885_s2, 2 }
  0x1e   : > { %s433_s23 = sshll.u32 %s431_s20, 4  ;;  %s434_s23 = int_to_ptr.hbm [resolvable:$true] %s433_s23 }
  0x1f   : > { %s2848_s18 = sshra.s32 %s434_s23, 4  ;;  %s2849_s18 = int_to_ptr.hbm [resolvable:$true] %s2848_s18 }
  0x20   : > { %s2850_s19 = scalar_lea.hbm %s2849_s18, 1  ;;  %p2856_p13 = scmp.lt.s32.totalorder %s2849_s18, %s3885_s2 }
  0x21   : > { %p2851_p9 = scmp.ne.s32.totalorder %s2849_s18, %s2850_s19  ;;  %p2857_p0 = scmp.lt.s32.totalorder %s2855_s15, %s2850_s19 }
  0x23   : > { %p2853_p11 = pnand %p2852_p10, %p2851_p9  ;;  %p2858_p1 = por %p2857_p0, %p2856_p13 }
  0x25   : > { %p2854_p12 = pneg %p2853_p11 }
  0x27   : > { %p2859_p2 = pnand %p2858_p1, %p2854_p12 }
  0x29   : > { %2862 = shalt.err (!%p2859_p2)
}
  0x2a   : > { %2690 = dma.hbm_to_vmem [thread:$0]  (!%p3174_p6), %s434_s23, 16, %s436_s22, %s3183_s14  }
  0x2b   : > { %p3204_p4 = por %p99_p8, %p98_p3  ;;  %p390_p5 = scmp.lt.s32.totalorder %s3042_s28, 3 }
  0x2c   : > { %p2579_p9 = scmp.ne.s32.totalorder %s3179_s30, 0  ;;  %s3888_s0 = sld [smem:[#allocation19_spill]] }
  0x2d   : > { %p3215_p11 = pnand %p2578_p7, %p390_p5  ;;  %s3044_s25 = smov [#allocation3]  }
  0x2e   : > { %s403_s22 = sshll.u32 %s3044_s25, 4  ;;  %s462_s20 = scalar_lea.hbm %s3863_s5, %s3042_s28  ;;  %s404_s22 = int_to_ptr.vmem [resolvable:$true] %s403_s22 }
  0x2f   : > { %p2683_p12 = pneg %p3215_p11  ;;  %s459_s21 = scalar_lea.vmem [#allocation8], %s3167_s17 }
  0x30   : > { %s466_s29 = sshll.u32 %s459_s21, 4  ;;  %s464_s15 = sshll.u32 %s462_s20, 4  ;;  %s465_s15 = int_to_ptr.hbm [resolvable:$true] %s464_s15  ;;  %s467_s29 = int_to_ptr.vmem [resolvable:$true] %s466_s29 }
  0x31   : > { %p2684_p3 = pnand %p2683_p12, %p99_p8  ;;  %s3046_s2 = smov 8  }
  0x32   : > { %s401_s16 = sshll.u32 %s3888_s0, 4  ;;  %s3045_s0 = smov 128   ;;  %s402_s16 = int_to_ptr.hbm [resolvable:$true] %s401_s16 }
  0x33   : > { %2686 = dma.hbm_to_vmem [thread:$0]  (!%p2684_p3), %s402_s16, 256, %s404_s22, [#allocation4], %s3045_s0, %s3045_s0, %s3046_s2  }
  0x34   : > { %s2908_s13 = sshra.s32 %s465_s15, 4  ;;  %s2915_s23 = scalar_lea.hbm %s3863_s5, 2  ;;  %s2909_s13 = int_to_ptr.hbm [resolvable:$true] %s2908_s13 }
  0x35   : > { %s2910_s12 = scalar_lea.hbm %s2909_s13, 1  ;;  %p2916_p1 = scmp.lt.s32.totalorder %s2909_s13, %s3863_s5 }
  0x36   : > { %p2911_p7 = scmp.ne.s32.totalorder %s2909_s13, %s2910_s12  ;;  %p2917_p2 = scmp.lt.s32.totalorder %s2915_s23, %s2910_s12 }
  0x38   : > { %p2913_p13 = pnand %p2911_p7, %p2852_p10  ;;  %p2918_p5 = por %p2917_p2, %p2916_p1 }
  0x3a   : > { %p2914_p0 = pneg %p2913_p13 }
  0x3c   : > { %p2919_p12 = pnand %p2918_p5, %p2914_p0 }
  0x3e   : > { %2922 = shalt.err (!%p2919_p12)
}
  0x3f   : > { %2693 = dma.hbm_to_vmem [thread:$0]  (!%p3174_p6), %s465_s15, 16, %s467_s29, %s3183_s14  }
  0x40   : > { %s513_s10 = scalar_lea.hbm %s3869_s11, %s3042_s28  ;;  %s510_s16 = scalar_lea.vmem [#allocation9], %s3167_s17 }
  0x41   : > { %s517_s22 = sshll.u32 %s510_s16, 4  ;;  %s515_s20 = sshll.u32 %s513_s10, 4  ;;  %s518_s22 = int_to_ptr.vmem [resolvable:$true] %s517_s22  ;;  %s516_s20 = int_to_ptr.hbm [resolvable:$true] %s515_s20 }
  0x42   : > { %s508_s12 = scalar_lea.sflag [#allocation10], %s3167_s17  ;;  %s2938_s13 = sshra.s32 %s516_s20, 4  ;;  %s2939_s13 = int_to_ptr.hbm [resolvable:$true] %s2938_s13 }
  0x43   : > { %s2940_s25 = scalar_lea.hbm %s2939_s13, 1  ;;  %s2945_s29 = scalar_lea.hbm %s3869_s11, 2 }
  0x44   : > { %p2941_p3 = scmp.ne.s32.totalorder %s2939_s13, %s2940_s25  ;;  %p2946_p0 = scmp.lt.s32.totalorder %s2939_s13, %s3869_s11 }
  0x45   : > { %p2947_p1 = scmp.lt.s32.totalorder %s2945_s29, %s2940_s25 }
  0x46   : > { %p2943_p7 = pnand %p2941_p3, %p2852_p10 }
  0x47   : > { %p2948_p2 = por %p2947_p1, %p2946_p0 }
  0x48   : > { %p2944_p13 = pneg %p2943_p7 }
  0x4a   : > { %p2949_p5 = pnand %p2948_p2, %p2944_p13 }
  0x4c   : > { %2952 = shalt.err (!%p2949_p5)
}
  0x4d   : > { %2696 = dma.hbm_to_vmem [thread:$0]  (!%p3174_p6), %s516_s20, 16, %s518_s22, %s508_s12  }
  0x4e   : > { %532 = sbr.rel (%p3215_p11) target bundleno = 2613 (0xa35), region = 72 }
  0x53   : > { %3013 = dma.done.wait (%p99_p8), [#allocation4], 256  }
  0x54   : > { %3015 = vsyncadd (%p99_p8), [#allocation4], 4294967040  ;;  %s539_s17 = sand.u32 1, %s3179_s30   ;;  %s3265_s19 = sand.u32 1, %s3034_s26  }
  0x55   : > { %s540_s21 = scalar_lea.sflag [#allocation7], %s539_s17 }
  0x56   : > { %3017 = dma.done.wait (%p3204_p4), %s540_s21, 32  }
  0x57   : > { %3019 = vsyncadd (%p3204_p4), %s540_s21, 4294967264  ;;  %s558_s18 = scalar_lea.sflag [#allocation10], %s3265_s19 }
  0x58   : > { %3021 = dma.done.wait (%p3204_p4), %s558_s18, 16  }
  0x59   : > { %3023 = vsyncadd (%p3204_p4), %s558_s18, 4294967280  ;;  %p641_p6 = scmp.lt.s32.totalorder %s3179_s30, 1  ;;  %s3890_s1 = sld [smem:[#allocation20_spill]] }
  0x5a   : > { %s3891_s3 = sld [smem:[#allocation22_spill]] }
  0x5b   : > { %s3281_s10 = scalar_select %p641_p6, %s3179_s30, 1 }
  0x5d   : > { %s2657_s16 = sshll.u32 %s3281_s10, 4  ;;  %s664_s24 = scalar_lea.vmem %s3866_s8, %s3281_s10 }
  0x5e   : > { %s3303_s2 = scalar_lea.vmem %s3865_s7, %s2657_s16  ;;  %s2660_s13 = sshll.u32 %s3281_s10, 5 }
  0x5f   : > { %s645_s25 = scalar_lea.vmem %s3890_s1, %s2657_s16  ;;  %s3313_s23 = scalar_lea.vmem %s3867_s9, %s2660_s13 }
  0x60   : > { %s3294_s29 = scalar_lea.vmem %s3891_s3, %s2657_s16  ;;  %s3892_s1 = sld [smem:[#allocation23_spill]] }
  0x61   : > { %s3893_s3 = sld [smem:[#allocation24_spill]] }
  0x63   : > { %680 = sbr.rel (%p2579_p9) target bundleno = 107 (0x6b), region = 92 }
  0x66   : > { %s672_s15 = scalar_lea.vmem %s3892_s1, %s3281_s10 }
  0x67   : > { %s675_s21 = scalar_lea.vmem %s3893_s3, %s3281_s10 }
  0x68   : > { %v681_v0 = vld [vmem:[#allocation3] sm:$0xff]  ;;  %vm683_vm0 = vcmask 261120   ;;  %v682_v1 = vld [vmem:[#allocation3 + $0x8] sm:$0xff] }
  0x69   : > { %684 = vst.msk [vmem:[#allocation11] sm:$0xff] %vm683_vm0, %v681_v0 }
  0x6a   : > { %685 = vst.msk [vmem:[#allocation11 + $0x8] sm:$0xff] %vm683_vm0, %v682_v1 }
  0x6b PF: > { %v2662_v2 = vld [vmem:[%s645_s25 + $0x8] sm:$0xff]  ;;  %v2661_v3 = vld [vmem:[%s645_s25] sm:$0xff]  ;;  %vm709_vm1 = vcmask 261120   ;;  %s3894_s1 = scalar_lea.vmem [#allocation6], %s3265_s19  ;;  %s3047_s3 = smov 120   ;;  %vm748_vm2 = vcmask 1047556  }
  0x6c   : > { %719 = vmatpush.bf16.msra.mxu0 %v2662_v2  ;;  %v3328_v7 = vld [vmem:[%s3894_s1] ss:$0 sm:$0xff]  ;;  %s3048_s0 = smov 112   ;;  %s3049_s16 = smov 104   ;;  %v3051_v15 = vmov 1983009808  }
  0x6d   : > { %s3050_s12 = smov 96   ;;  %v753_v16 = vunpack.c.l.s4 %v3051_v15  ;;  %v3052_v28 = vmov 1934713408   ;;  %vm1114_vm3 = vcmask 64512   ;;  %s3054_s25 = smov 64   ;;  %vm1242_vm5 = vcmask 1043456  }
  0x6e   : > { %v777_v29 = vunpack.c.l.s4 %v3052_v28  ;;  %s3895_s18 = scalar_lea.vmem %s3862_s4, %s3281_s10  ;;  %s3897_s13 = scalar_lea.vmem %s3864_s6, %s3281_s10 }
  0x6f   : > { %v3342_v21 = vunpack.c.0.s8 %v753_v16  ;;  %s3901_s10 = sld [smem:[#allocation25_spill]]  ;;  %p2700_p8 = scmp.eq.s32.totalorder %s3179_s30, 1 }
  0x70   : > { %v686_v4 = vld [vmem:[#allocation11] sm:$0xff]  ;;  %720 = vmatpush.bf16.msra.mxu0 %v2661_v3  ;;  %v3352_v35 = vunpack.c.0.s8 %v777_v29  ;;  %s3059_s17 = smov 8  }
  0x71   : > { %v687_v5 = vld [vmem:[#allocation11 + $0x8] sm:$0xff] }
  0x72   : > { %v688_v6 = vpack.c.bf16 %v687_v5, %v686_v4 }
  0x74   : > { %2600 = vmatmul.msk.bf16.vlgmr.msra.gmra.mxu0 %vm709_vm1, %v688_v6 }
  0xf1   : > { %v722_v8 = vpop.f32.mrf.mxu0 }
  0xf2   : > { %v723_v9 = vadd.f32 %v3328_v7, %v722_v8 }
  0xf4   : > { %738 = vrot.lane.b32.xlu1 %v723_v9, %s3047_s3  ;;  %741 = vrot.lane.b32.xlu0 %v723_v9, %s3048_s0  ;;  %v750_v18 = vrot.slane %v723_v9, 4 }
  0xfc   : > { %744 = vrot.lane.b32.xlu0 %v723_v9, %s3049_s16 }
 0x166   : > { %v742_v10 = vpop.permute.xlu0 %741  ;;  %v739_v12 = vpop.permute.xlu1 %738 }
 0x167   : > { %v3334_v11 = vpack.i.bf16 %v723_v9, %v742_v10  ;;  %v747_v17 = vrot.slane %v742_v10, 4  ;;  %v762_v20 = vrot.slane %v739_v12, 4  ;;  %v751_v22 = vsel %vm748_vm2, %v742_v10, %v750_v18 }
 0x168   : > { %v759_v26 = vperm.slane %v751_v22, %v3342_v21 }
 0x169   : > { %2751 = vrot.lane.b32.xlu1 %v3334_v11, %s3050_s12  ;;  %v749_v23 = vsel %vm748_vm2, %v747_v17, %v723_v9 }
 0x16a   : > { %v755_v27 = vperm.slane %v749_v23, %v3342_v21  ;;  %v786_v32 = vrot.slane %v759_v26, 4 }
 0x16c   : > { %v774_v34 = vrot.slane %v755_v27, 4 }
 0x16e   : > { %v745_v13 = vpop.permute.xlu0 %744 }
 0x16f   : > { %v3338_v14 = vpack.i.bf16 %v739_v12, %v745_v13  ;;  %v760_v19 = vrot.slane %v745_v13, 4  ;;  %v763_v24 = vsel %vm748_vm2, %v745_v13, %v762_v20 }
 0x170   : > { %v771_v30 = vperm.slane %v763_v24, %v3342_v21 }
 0x171   : > { %2756 = vrot.lane.b32.xlu2 %v3338_v14, %s3050_s12  ;;  %v761_v25 = vsel %vm748_vm2, %v760_v19, %v739_v12 }
 0x172   : > { %v767_v31 = vperm.slane %v761_v25, %v3342_v21  ;;  %v784_v36 = vrot.slane %v771_v30, 4  ;;  %v787_v38 = vsel %vm748_vm2, %v771_v30, %v786_v32 }
 0x173   : > { %v795_v43 = vperm.slane %v787_v38, %v3352_v35 }
 0x174   : > { %v772_v37 = vrot.slane %v767_v31, 4  ;;  %v775_v39 = vsel %vm748_vm2, %v767_v31, %v774_v34  ;;  %v785_v42 = vsel %vm748_vm2, %v784_v36, %v759_v26 }
 0x175   : > { %v783_v45 = vperm.slane %v775_v39, %v3352_v35  ;;  %v791_v48 = vperm.slane %v785_v42, %v3352_v35  ;;  %v802_v50 = vrot.slane %v795_v43, 4 }
 0x176   : > { %v773_v44 = vsel %vm748_vm2, %v772_v37, %v755_v27 }
 0x177   : > { %v779_v49 = vperm.slane %v773_v44, %v3352_v35  ;;  %v798_v51 = vrot.slane %v783_v45, 4  ;;  %v800_v54 = vrot.slane %v791_v48, 4  ;;  %v803_v56 = vsel %vm748_vm2, 0.0, %v802_v50 }
 0x178   : > { %v820_v2 = vrot.slane %v803_v56, 4  ;;  %v815_v13 = vsel %vm748_vm2, %v802_v50, %v791_v48 }
 0x179   : > { %v796_v59 = vrot.slane %v779_v49, 4  ;;  %v799_v60 = vsel %vm748_vm2, 0.0, %v798_v51  ;;  %v801_v1 = vsel %vm748_vm2, 0.0, %v800_v54  ;;  %v804_v15 = vsel %vm748_vm2, %v798_v51, %v779_v49 }
 0x17a   : > { %v809_v3 = vrot.slane %v799_v60, 4  ;;  %v821_v24 = vsel %vm748_vm2, %v820_v2, %v801_v1  ;;  %v808_v27 = vperm.slane %v804_v15, %v3342_v21  ;;  %v819_v28 = vperm.slane %v815_v13, %v3342_v21 }
 0x17b   : > { %v797_v6 = vsel %vm748_vm2, 0.0, %v796_v59  ;;  %v825_v32 = vperm.slane %v821_v24, %v3342_v21 }
 0x17c   : > { %v810_v23 = vsel %vm748_vm2, %v809_v3, %v797_v6  ;;  %v828_v38 = vrot.slane %v808_v27, 4  ;;  %v840_v39 = vrot.slane %v819_v28, 4 }
 0x17d   : > { %v814_v31 = vperm.slane %v810_v23, %v3342_v21  ;;  %v838_v51 = vrot.slane %v825_v32, 4 }
 0x17e   : > { %v841_v59 = vsel %vm748_vm2, %v825_v32, %v840_v39 }
 0x17f   : > { %v826_v50 = vrot.slane %v814_v31, 4  ;;  %v839_v3 = vsel %vm748_vm2, %v838_v51, %v819_v28 }
 0x181   : > { %v827_v2 = vsel %vm748_vm2, %v826_v50, %v808_v27 }
 0x182   : > { %v833_v15 = vperm.slane %v827_v2, %v3352_v35 }
 0x1cb   : > { %v2757_v33 = vpop.permute.xlu2 %2756 }
 0x1cc   : > { %v2759_v40 = vunpack.i.h.bf16 %v2757_v33  ;;  %v2758_v41 = vunpack.i.l.bf16 %v2757_v33 }
 0x1ce   : > { %v888_v46 = vrot.slane %v2759_v40, 4  ;;  %v886_v47 = vrot.slane %v2758_v41, 4 }
 0x1d0   : > { %v887_v52 = vsel %vm748_vm2, %v886_v47, %v2759_v40  ;;  %v889_v53 = vsel %vm748_vm2, %v2758_v41, %v888_v46 }
 0x1d1   : > { %v893_v61 = vperm.slane %v887_v52, %v3342_v21  ;;  %v897_v62 = vperm.slane %v889_v53, %v3342_v21 }
 0x1d3   : > { %v898_v8 = vrot.slane %v893_v61, 4  ;;  %v910_v9 = vrot.slane %v897_v62, 4 }
 0x1db   : > { %v2752_v55 = vpop.permute.xlu1 %2751 }
 0x1dc   : > { %v2754_v57 = vunpack.i.h.bf16 %v2752_v55  ;;  %v2753_v58 = vunpack.i.l.bf16 %v2752_v55 }
 0x1de   : > { %v876_v63 = vrot.slane %v2754_v57, 4  ;;  %v874_v0 = vrot.slane %v2753_v58, 4 }
 0x1e0   : > { %v875_v4 = vsel %vm748_vm2, %v874_v0, %v2754_v57  ;;  %v877_v5 = vsel %vm748_vm2, %v2753_v58, %v876_v63  ;;  %v829_v58 = vsel %vm748_vm2, %v814_v31, %v828_v38 }
 0x1e1   : > { %v881_v10 = vperm.slane %v875_v4, %v3342_v21  ;;  %v885_v12 = vperm.slane %v877_v5, %v3342_v21  ;;  %v837_v6 = vperm.slane %v829_v58, %v3352_v35 }
 0x1e3   : > { %v899_v16 = vsel %vm748_vm2, %v898_v8, %v881_v10  ;;  %v900_v17 = vrot.slane %v881_v10, 4  ;;  %v911_v18 = vsel %vm748_vm2, %v910_v9, %v885_v12  ;;  %v912_v19 = vrot.slane %v885_v12, 4 }
 0x1e4   : > { %v905_v20 = vperm.slane %v899_v16, %v3352_v35  ;;  %v917_v22 = vperm.slane %v911_v18, %v3352_v35  ;;  %v849_v8 = vperm.slane %v841_v59, %v3352_v35  ;;  %v845_v16 = vperm.slane %v839_v3, %v3352_v35 }
 0x1e5   : > { %v901_v25 = vsel %vm748_vm2, %v893_v61, %v900_v17  ;;  %v913_v26 = vsel %vm748_vm2, %v897_v62, %v912_v19  ;;  %v856_v27 = vrot.slane %v837_v6, 4 }
 0x1e6   : > { %v909_v29 = vperm.slane %v901_v25, %v3352_v35  ;;  %v921_v30 = vperm.slane %v913_v26, %v3352_v35  ;;  %v922_v33 = vrot.slane %v905_v20, 4  ;;  %v926_v36 = vrot.slane %v917_v22, 4 }
 0x1e7   : > { %v854_v26 = vrot.slane %v849_v8, 4  ;;  %v850_v32 = vrot.slane %v845_v16, 4  ;;  %v857_v38 = vsel %vm748_vm2, %v849_v8, %v856_v27 }
 0x1e8   : > { %v924_v34 = vrot.slane %v909_v29, 4  ;;  %v928_v37 = vrot.slane %v921_v30, 4  ;;  %v927_v48 = vsel %vm748_vm2, 0.0, %v926_v36  ;;  %v923_v49 = vsel %vm748_vm2, 0.0, %v922_v33 }
 0x1e9   : > { %v852_v33 = vrot.slane %v833_v15, 4  ;;  %v851_v39 = vsel %vm748_vm2, %v850_v32, %v833_v15 }
 0x1ea   : > { %v925_v40 = vsel %vm748_vm2, 0.0, %v924_v34  ;;  %v929_v41 = vsel %vm748_vm2, 0.0, %v928_v37  ;;  %v930_v42 = vsel %vm748_vm2, %v924_v34, %v905_v20  ;;  %v941_v43 = vsel %vm748_vm2, %v928_v37, %v917_v22 }
 0x1eb   : > { %v946_v44 = vrot.slane %v929_v41, 4  ;;  %v934_v45 = vperm.slane %v930_v42, %v3342_v21  ;;  %v935_v46 = vrot.slane %v925_v40, 4  ;;  %v945_v47 = vperm.slane %v941_v43, %v3342_v21 }
 0x1ec   : > { %v855_v37 = vsel %vm748_vm2, %v854_v26, %v837_v6  ;;  %v853_v40 = vsel %vm748_vm2, %v845_v16, %v852_v33  ;;  %v861_v42 = vpack.c.bf16 %v857_v38, %v857_v38  ;;  %v858_v43 = vpack.c.bf16 %v851_v39, %v851_v39 }
 0x1ed   : > { %v936_v52 = vsel %vm748_vm2, %v935_v46, %v923_v49  ;;  %v947_v53 = vsel %vm748_vm2, %v946_v44, %v927_v48  ;;  %v954_v54 = vrot.slane %v934_v45, 4  ;;  %v966_v55 = vrot.slane %v945_v47, 4  ;;  %v724_v48 = vpop.f32.mrf.mxu0 }
 0x1ee   : > { %v940_v56 = vperm.slane %v936_v52, %v3342_v21  ;;  %v951_v57 = vperm.slane %v947_v53, %v3342_v21  ;;  %v860_v41 = vpack.c.bf16 %v855_v37, %v855_v37  ;;  %v859_v44 = vpack.c.bf16 %v853_v40, %v853_v40 }
 0x1ef   : > { %v3053_v49 = vmov -1e+20   ;;  %v3449_v3 = vadd.f32 %v3328_v7, %v724_v48 }
 0x1f0   : > { %v955_v60 = vsel %vm748_vm2, %v940_v56, %v954_v54  ;;  %v967_v61 = vsel %vm748_vm2, %v951_v57, %v966_v55  ;;  %v952_v62 = vrot.slane %v940_v56, 4  ;;  %v964_v63 = vrot.slane %v951_v57, 4 }
 0x1f1   : > { %v963_v0 = vperm.slane %v955_v60, %v3352_v35  ;;  %v975_v1 = vperm.slane %v967_v61, %v3352_v35 }
 0x1f2   : > { %v953_v4 = vsel %vm748_vm2, %v952_v62, %v934_v45  ;;  %v965_v5 = vsel %vm748_vm2, %v964_v63, %v945_v47  ;;  %v731_v45 = vlaneseq }
 0x1f3   : > { %v980_v9 = vrot.slane %v975_v1, 4  ;;  %v982_v10 = vrot.slane %v963_v0, 4  ;;  %v959_v12 = vperm.slane %v953_v4, %v3352_v35  ;;  %v971_v13 = vperm.slane %v965_v5, %v3352_v35 }
 0x1f4   : > { %v732_v46 = vshrl.u32 %v731_v45, 7  ;;  %v734_v47 = vand.u32 127, %v731_v45 }
 0x1f5   : > { %v981_v17 = vsel %vm748_vm2, %v980_v9, %v963_v0  ;;  %v983_v18 = vsel %vm748_vm2, %v975_v1, %v982_v10  ;;  %v976_v19 = vrot.slane %v971_v13, 4  ;;  %v978_v20 = vrot.slane %v959_v12, 4 }
 0x1f6   : > { %v986_v22 = vpack.c.bf16 %v981_v17, %v981_v17  ;;  %v987_v23 = vpack.c.bf16 %v983_v18, %v983_v18  ;;  %vm735_vm4 = vcmp.ge.s32.totalorder %v732_v46, %v734_v47 }
 0x1f7   : > { %v977_v24 = vsel %vm748_vm2, %v976_v19, %v959_v12  ;;  %v979_v25 = vsel %vm748_vm2, %v971_v13, %v978_v20  ;;  %v3434_v50 = vsel %vm735_vm4, 0.0, %v3053_v49 }
 0x1f8   : > { %v1157_v28 = vsel %vm1114_vm3, %v986_v22, 0  ;;  %v1176_v29 = vsel %vm1114_vm3, %v987_v23, 0  ;;  %v984_v30 = vpack.c.bf16 %v977_v24, %v977_v24  ;;  %v985_v31 = vpack.c.bf16 %v979_v25, %v979_v25 }
 0x1f9   : > { %1166 = vmatpush.bf16.xpose.msra.mxu3 %v1157_v28  ;;  %1185 = vmatpush.bf16.xpose.msrb.mxu0 %v1176_v29 }
 0x1fa   : > { %v1119_v34 = vsel %vm1114_vm3, %v984_v30, 0  ;;  %v1138_v36 = vsel %vm1114_vm3, %v985_v31, 0 }
 0x1fb   : > { %1128 = vmatpush.bf16.xpose.msra.mxu1 %v1119_v34  ;;  %1147 = vmatpush.bf16.xpose.msra.mxu2 %v1138_v36 }
 0x200   : > { %2603 = vmatmul.msk.bf16.vlgmr.msra.gmra.mxu3 %vm1114_vm3, %v860_v41  ;;  %2604 = vmatmul.msk.bf16.vlgmr.msrb.gmra.mxu0 %vm1114_vm3, %v861_v42 }
 0x202   : > { %2601 = vmatmul.msk.bf16.vlgmr.msra.gmra.mxu1 %vm1114_vm3, %v858_v43  ;;  %2602 = vmatmul.msk.bf16.vlgmr.msra.gmra.mxu2 %vm1114_vm3, %v859_v44 }
 0x27d   : > { %v1187_v51 = vpop.f32.mrf.mxu0 }
 0x27e   : > { %v1188_v52 = vadd.f32 %v1187_v51, %v3434_v50 }
 0x27f   : > { %v1130_v53 = vpop.f32.mrf.mxu1 }
 0x280   : > { %v1131_v54 = vadd.f32 %v1130_v53, %v3434_v50  ;;  %v1200_v55 = vsel %vm1114_vm3, %v1188_v52, -inf }
 0x281   : > { %1201 = vmax.xlane.f32.xlu2 %v1200_v55 }
 0x282   : > { %v1191_v56 = vsel %vm1114_vm3, %v1131_v54, -inf }
 0x283   : > { %v1168_v57 = vpop.f32.mrf.mxu3  ;;  %1192 = vmax.xlane.f32.xlu1 %v1191_v56 }
 0x284   : > { %v1169_v58 = vadd.f32 %v1168_v57, %v3434_v50 }
 0x285   : > { %v1149_v59 = vpop.f32.mrf.mxu2  ;;  %v1189_v60 = vpop.f32.mrf.mxu0 }
 0x286   : > { %v1150_v61 = vadd.f32 %v1149_v59, %v3434_v50  ;;  %v1197_v62 = vsel %vm1114_vm3, %v1169_v58, -inf }
 0x287   : > { %1198 = vmax.xlane.f32.xlu0 %v1197_v62  ;;  %v1132_v63 = vpop.f32.mrf.mxu1 }
 0x288   : > { %v1194_v0 = vsel %vm1114_vm3, %v1150_v61, -inf }
 0x289   : > { %1195 = vmax.xlane.f32.xlu2 %v1194_v0 }
 0x28b   : > { %v1170_v1 = vpop.f32.mrf.mxu3 }
 0x28d   : > { %v1151_v2 = vpop.f32.mrf.mxu2 }
 0x29b   : > { %2766 = vrot.lane.b32.xlu0 %v3338_v14, %s3054_s25 }
 0x2a1   : > { %2761 = vrot.lane.b32.xlu2 %v3334_v11, %s3054_s25 }
 0x2a9   : > { %1409 = vrot.lane.b32.xlu2 %v3449_v3, %s3048_s0 }
 0x2b1   : > { %1406 = vrot.lane.b32.xlu2 %v3449_v3, %s3047_s3 }
 0x2f4   : > { %v1202_v4 = vpop.xlane.xlu2 %1201 }
 0x2f5   : > { %v1206_v5 = vsub.f32 %v1188_v52, %v1202_v4 }
 0x2f6   : > { %v1193_v13 = vpop.xlane.xlu1 %1192 }
 0x2f7   : > { %v1213_v6 = vmul.f32 1.442695, %v1206_v5  ;;  %v1203_v19 = vsub.f32 %v1131_v54, %v1193_v13 }
 0x2f9   : > { %2798 = vpow2.f32 %v1213_v6  ;;  %v1207_v25 = vmul.f32 1.442695, %v1203_v19 }
 0x2fa   : > { %v1199_v8 = vpop.xlane.xlu0 %1198 }
 0x2fb   : > { %v1205_v12 = vsub.f32 %v1169_v58, %v1199_v8 }
 0x2fc   : > { %v1196_v9 = vpop.xlane.xlu2 %1195 }
 0x2fd   : > { %v1204_v10 = vsub.f32 %v1150_v61, %v1196_v9  ;;  %v1211_v15 = vmul.f32 1.442695, %v1205_v12 }
 0x2ff   : > { %v3455_v14 = vpop.eup %2798  ;;  %v1209_v11 = vmul.f32 1.442695, %v1204_v10 }
 0x300   : > { %v1224_v7 = vsel %vm1114_vm3, %v3455_v14, 0.0 }
 0x301   : > { %2800 = vpow2.f32 %v1209_v11  ;;  %1225 = vadd.xlane.f32.xlu0 %v1224_v7 }
 0x302   : > { %2802 = vpow2.f32 %v1211_v15 }
 0x303   : > { %2804 = vpow2.f32 %v1207_v25 }
 0x304   : > { %v2762_v16 = vpop.permute.xlu2 %2761 }
 0x305   : > { %v2764_v17 = vunpack.i.h.bf16 %v2762_v16  ;;  %v2763_v18 = vunpack.i.l.bf16 %v2762_v16 }
 0x307   : > { %v3459_v20 = vpop.eup %2800  ;;  %v1002_v22 = vrot.slane %v2764_v17, 4  ;;  %v1000_v23 = vrot.slane %v2763_v18, 4 }
 0x308   : > { %v1218_v24 = vsel %vm1114_vm3, %v3459_v20, 0.0  ;;  %v3467_v29 = vpop.eup %2802 }
 0x309   : > { %1219 = vadd.xlane.f32.xlu1 %v1218_v24  ;;  %v1001_v26 = vsel %vm748_vm2, %v1000_v23, %v2764_v17  ;;  %v1003_v27 = vsel %vm748_vm2, %v2763_v18, %v1002_v22  ;;  %v1221_v39 = vsel %vm1114_vm3, %v3467_v29, 0.0  ;;  %v3483_v46 = vpop.eup %2804 }
 0x30a   : > { %v1007_v34 = vperm.slane %v1001_v26, %v3342_v21  ;;  %v1011_v36 = vperm.slane %v1003_v27, %v3342_v21  ;;  %v1215_v56 = vsel %vm1114_vm3, %v3483_v46, 0.0 }
 0x30c   : > { %v3465_v28 = vpop.permute.xlu2 %1409  ;;  %v1026_v42 = vrot.slane %v1007_v34, 4  ;;  %v1038_v43 = vrot.slane %v1011_v36, 4 }
 0x30d   : > { %v2767_v30 = vpop.permute.xlu0 %2766  ;;  %v3471_v31 = vpack.i.bf16 %v3449_v3, %v3465_v28 }
 0x30e   : > { %v2769_v32 = vunpack.i.h.bf16 %v2767_v30  ;;  %v2768_v33 = vunpack.i.l.bf16 %v2767_v30 }
 0x30f   : > { %2771 = vrot.lane.b32.xlu2 %v3471_v31, %s3050_s12 }
 0x310   : > { %v1014_v37 = vrot.slane %v2769_v32, 4  ;;  %v1012_v38 = vrot.slane %v2768_v33, 4 }
 0x311   : > { %1222 = vadd.xlane.f32.xlu1 %v1221_v39 }
 0x312   : > { %v1013_v40 = vsel %vm748_vm2, %v1012_v38, %v2769_v32  ;;  %v1015_v41 = vsel %vm748_vm2, %v2768_v33, %v1014_v37 }
 0x313   : > { %v1019_v44 = vperm.slane %v1013_v40, %v3342_v21  ;;  %v1023_v45 = vperm.slane %v1015_v41, %v3342_v21 }
 0x315   : > { %v1024_v47 = vrot.slane %v1019_v44, 4  ;;  %v1027_v48 = vsel %vm748_vm2, %v1019_v44, %v1026_v42  ;;  %v1036_v49 = vrot.slane %v1023_v45, 4  ;;  %v1039_v51 = vsel %vm748_vm2, %v1023_v45, %v1038_v43 }
 0x316   : > { %v1035_v52 = vperm.slane %v1027_v48, %v3352_v35  ;;  %v1047_v53 = vperm.slane %v1039_v51, %v3352_v35 }
 0x317   : > { %v1025_v54 = vsel %vm748_vm2, %v1024_v47, %v1007_v34  ;;  %v1037_v55 = vsel %vm748_vm2, %v1036_v49, %v1011_v36 }
 0x318   : > { %v1031_v57 = vperm.slane %v1025_v54, %v3352_v35  ;;  %v1043_v58 = vperm.slane %v1037_v55, %v3352_v35  ;;  %v1050_v59 = vrot.slane %v1035_v52, 4  ;;  %v1054_v60 = vrot.slane %v1047_v53, 4 }
 0x319   : > { %1216 = vadd.xlane.f32.xlu1 %v1215_v56 }
 0x31a   : > { %v1048_v61 = vrot.slane %v1031_v57, 4  ;;  %v1051_v62 = vsel %vm748_vm2, 0.0, %v1050_v59  ;;  %v1052_v63 = vrot.slane %v1043_v58, 4  ;;  %v1055_v0 = vsel %vm748_vm2, 0.0, %v1054_v60 }
 0x31b   : > { %v1061_v1 = vrot.slane %v1051_v62, 4  ;;  %v1072_v2 = vrot.slane %v1055_v0, 4  ;;  %v1056_v4 = vsel %vm748_vm2, %v1050_v59, %v1031_v57  ;;  %v1067_v5 = vsel %vm748_vm2, %v1054_v60, %v1043_v58 }
 0x31c   : > { %v1049_v6 = vsel %vm748_vm2, 0.0, %v1048_v61  ;;  %v1053_v8 = vsel %vm748_vm2, 0.0, %v1052_v63  ;;  %v1060_v9 = vperm.slane %v1056_v4, %v3342_v21  ;;  %v1071_v10 = vperm.slane %v1067_v5, %v3342_v21 }
 0x31d   : > { %v1062_v12 = vsel %vm748_vm2, %v1061_v1, %v1049_v6  ;;  %v1073_v11 = vsel %vm748_vm2, %v1072_v2, %v1053_v8  ;;  %v1415_v6 = vrot.slane %v3465_v28, 4  ;;  %v1417_v8 = vrot.slane %v3449_v3, 4 }
 0x31e   : > { %v1066_v7 = vperm.slane %v1062_v12, %v3342_v21  ;;  %v1077_v13 = vperm.slane %v1073_v11, %v3342_v21  ;;  %v1080_v15 = vrot.slane %v1060_v9, 4  ;;  %v1092_v16 = vrot.slane %v1071_v10, 4 }
 0x31f   : > { %v1418_v12 = vsel %vm748_vm2, %v3465_v28, %v1417_v8  ;;  %v1416_v11 = vsel %vm748_vm2, %v1415_v6, %v3449_v3 }
 0x320   : > { %v1081_v17 = vsel %vm748_vm2, %v1066_v7, %v1080_v15  ;;  %v1093_v18 = vsel %vm748_vm2, %v1077_v13, %v1092_v16  ;;  %v1078_v19 = vrot.slane %v1066_v7, 4  ;;  %v1090_v22 = vrot.slane %v1077_v13, 4  ;;  %v729_v13 = vld [vmem:[%s3294_s29 + $0x8] sm:$0xf] }
 0x321   : > { %v1089_v23 = vperm.slane %v1081_v17, %v3352_v35  ;;  %v1101_v24 = vperm.slane %v1093_v18, %v3352_v35  ;;  %v1426_v15 = vperm.slane %v1418_v12, %v3342_v21  ;;  %v3558_v18 = vsel %vm1242_vm5, %v729_v13, 0 }
 0x322   : > { %v1079_v25 = vsel %vm748_vm2, %v1078_v19, %v1060_v9  ;;  %v1091_v26 = vsel %vm748_vm2, %v1090_v22, %v1071_v10  ;;  %v1422_v19 = vperm.slane %v1416_v11, %v3342_v21 }
 0x323   : > { %v1106_v27 = vrot.slane %v1101_v24, 4  ;;  %v1108_v30 = vrot.slane %v1089_v23, 4  ;;  %v1085_v32 = vperm.slane %v1079_v25, %v3352_v35  ;;  %v1097_v33 = vperm.slane %v1091_v26, %v3352_v35 }
 0x324   : > { %v1441_v25 = vrot.slane %v1422_v19, 4 }
 0x325   : > { %v1107_v34 = vsel %vm748_vm2, %v1106_v27, %v1089_v23  ;;  %v1109_v36 = vsel %vm748_vm2, %v1101_v24, %v1108_v30  ;;  %v1102_v37 = vrot.slane %v1097_v33, 4  ;;  %v1104_v38 = vrot.slane %v1085_v32, 4  ;;  %v727_v24 = vld [vmem:[%s3294_s29] sm:$0xf] }
 0x326   : > { %v1112_v39 = vpack.c.bf16 %v1107_v34, %v1107_v34  ;;  %v1113_v40 = vpack.c.bf16 %v1109_v36, %v1109_v36  ;;  %v1453_v23 = vrot.slane %v1426_v15, 4  ;;  %v3566_v30 = vsel %vm1242_vm5, %v727_v24, 0 }
 0x327   : > { %v1103_v41 = vsel %vm748_vm2, %v1102_v37, %v1085_v32  ;;  %v1105_v42 = vsel %vm748_vm2, %v1097_v33, %v1104_v38 }
 0x328   : > { %v1282_v43 = vsel %vm1242_vm5, %v1112_v39, 0  ;;  %v1301_v44 = vsel %vm1242_vm5, %v1113_v40, 0  ;;  %v1110_v45 = vpack.c.bf16 %v1103_v41, %v1103_v41  ;;  %v1111_v47 = vpack.c.bf16 %v1105_v42, %v1105_v42 }
 0x329   : > { %1291 = vmatpush.bf16.msrb.mxu3 %v1282_v43  ;;  %1310 = vmatpush.bf16.msra.mxu0 %v1301_v44 }
 0x32a   : > { %v1244_v48 = vsel %vm1242_vm5, %v1110_v45, 0  ;;  %v1263_v49 = vsel %vm1242_vm5, %v1111_v47, 0 }
 0x32b   : > { %1253 = vmatpush.bf16.msrb.mxu1 %v1244_v48  ;;  %1272 = vmatpush.bf16.msrb.mxu2 %v1263_v49 }
 0x32d   : > { %1371 = vmatpush.bf16.msra.mxu3 %v3558_v18 }
 0x32f   : > { %1333 = vmatpush.bf16.msra.mxu1 %v3566_v30 }
 0x332   : > { %1412 = vrot.lane.b32.xlu1 %v3449_v3, %s3049_s16 }
 0x374   : > { %v1226_v51 = vpop.xlane.xlu0 %1225 }
 0x375   : > { %2806 = vrcp.f32 %v1226_v51 }
 0x37b   : > { %v2807_v52 = vpop.eup %2806 }
 0x37c   : > { %v1234_v53 = vmul.f32 %v2807_v52, %v3455_v14  ;;  %v1220_v54 = vpop.xlane.xlu1 %1219 }
 0x37d   : > { %2808 = vrcp.f32 %v1220_v54 }
 0x37e   : > { %v1238_v55 = vpack.c.bf16 %v1234_v53, %v1234_v53 }
 0x380   : > { %2608 = vmatmul.msk.bf16.vlgmr.msra.gmra.mxu0 %vm1114_vm3, %v1238_v55 }
 0x383   : > { %v2809_v56 = vpop.eup %2808 }
 0x384   : > { %v1232_v57 = vmul.f32 %v2809_v56, %v3459_v20  ;;  %v1223_v58 = vpop.xlane.xlu1 %1222  ;;  %v1407_v20 = vpop.permute.xlu2 %1406 }
 0x385   : > { %2810 = vrcp.f32 %v1223_v58  ;;  %v1429_v7 = vrot.slane %v1407_v20, 4 }
 0x386   : > { %v1236_v59 = vpack.c.bf16 %v1232_v57, %v1232_v57 }
 0x388   : > { %2606 = vmatmul.msk.bf16.vlgmr.msrb.gmra.mxu2 %vm1114_vm3, %v1236_v59 }
 0x38b   : > { %v2811_v60 = vpop.eup %2810 }
 0x38c   : > { %v1233_v61 = vmul.f32 %v2811_v60, %v3467_v29  ;;  %v1217_v62 = vpop.xlane.xlu1 %1216  ;;  %v730_v29 = vld [vmem:[%s3294_s29 + $0xc] sm:$0xf]  ;;  %v2772_v22 = vpop.permute.xlu2 %2771 }
 0x38d   : > { %2812 = vrcp.f32 %v1217_v62  ;;  %v3539_v5 = vsel %vm1242_vm5, %v730_v29, 0  ;;  %v2774_v26 = vunpack.i.h.bf16 %v2772_v22  ;;  %v2773_v27 = vunpack.i.l.bf16 %v2772_v22 }
 0x38e   : > { %v1237_v14 = vpack.c.bf16 %v1233_v61, %v1233_v61  ;;  %1390 = vmatpush.bf16.msrb.mxu0 %v3539_v5 }
 0x38f   : > { %v1543_v37 = vrot.slane %v2774_v26, 4  ;;  %v1541_v38 = vrot.slane %v2773_v27, 4 }
 0x390   : > { %2607 = vmatmul.msk.bf16.vlgmr.msrb.gmra.mxu3 %vm1114_vm3, %v1237_v14 }
 0x391   : > { %v1542_v44 = vsel %vm748_vm2, %v1541_v38, %v2774_v26  ;;  %v1544_v45 = vsel %vm748_vm2, %v2773_v27, %v1543_v37 }
 0x392   : > { %v1548_v53 = vperm.slane %v1542_v44, %v3342_v21  ;;  %v1552_v54 = vperm.slane %v1544_v45, %v3342_v21 }
 0x393   : > { %v2813_v63 = vpop.eup %2812 }
 0x394   : > { %v1231_v0 = vmul.f32 %v2813_v63, %v3483_v46  ;;  %v728_v46 = vld [vmem:[%s3294_s29 + $0x4] sm:$0xf]  ;;  %v1567_v63 = vrot.slane %v1548_v53, 4  ;;  %s3058_s29 = smov 128  }
 0x395   : > { %v3546_v9 = vsel %vm1242_vm5, %v728_v46, 0 }
 0x396   : > { %v1235_v1 = vpack.c.bf16 %v1231_v0, %v1231_v0  ;;  %1352 = vmatpush.bf16.msra.mxu2 %v3546_v9  ;;  %v1579_v0 = vrot.slane %v1552_v54, 4 }
 0x398   : > { %2605 = vmatmul.msk.bf16.vlgmr.msrb.gmra.mxu1 %vm1114_vm3, %v1235_v1 }
 0x3a4   : > { %v1413_v2 = vpop.permute.xlu1 %1412 }
 0x3a5   : > { %v3533_v4 = vpack.i.bf16 %v1407_v20, %v1413_v2  ;;  %v1427_v10 = vrot.slane %v1413_v2, 4  ;;  %v1430_v17 = vsel %vm748_vm2, %v1413_v2, %v1429_v7 }
 0x3a6   : > { %v1438_v3 = vperm.slane %v1430_v17, %v3342_v21 }
 0x3a7   : > { %2776 = vrot.lane.b32.xlu2 %v3533_v4, %s3050_s12  ;;  %v1428_v16 = vsel %vm748_vm2, %v1427_v10, %v1407_v20 }
 0x3a8   : > { %v1434_v28 = vperm.slane %v1428_v16, %v3342_v21  ;;  %v1451_v34 = vrot.slane %v1438_v3, 4  ;;  %v1454_v36 = vsel %vm748_vm2, %v1438_v3, %v1453_v23 }
 0x3a9   : > { %v1462_v40 = vperm.slane %v1454_v36, %v3352_v35 }
 0x3aa   : > { %v1439_v32 = vrot.slane %v1434_v28, 4  ;;  %v1442_v33 = vsel %vm748_vm2, %v1434_v28, %v1441_v25  ;;  %v1452_v42 = vsel %vm748_vm2, %v1451_v34, %v1426_v15 }
 0x3ab   : > { %v1450_v39 = vperm.slane %v1442_v33, %v3352_v35  ;;  %v1458_v49 = vperm.slane %v1452_v42, %v3352_v35  ;;  %v1469_v52 = vrot.slane %v1462_v40, 4 }
 0x3ac   : > { %v1440_v41 = vsel %vm748_vm2, %v1439_v32, %v1422_v19 }
 0x3ad   : > { %v1446_v48 = vperm.slane %v1440_v41, %v3352_v35  ;;  %v1465_v51 = vrot.slane %v1450_v39, 4  ;;  %v1467_v60 = vrot.slane %v1458_v49, 4  ;;  %v1470_v61 = vsel %vm748_vm2, 0.0, %v1469_v52 }
 0x3ae   : > { %v1487_v29 = vrot.slane %v1470_v61, 4  ;;  %v1482_v13 = vsel %vm748_vm2, %v1469_v52, %v1458_v49 }
 0x3af   : > { %v1463_v58 = vrot.slane %v1446_v48, 4  ;;  %v1466_v59 = vsel %vm748_vm2, 0.0, %v1465_v51  ;;  %v1471_v1 = vsel %vm748_vm2, %v1465_v51, %v1446_v48  ;;  %v1468_v10 = vsel %vm748_vm2, 0.0, %v1467_v60 }
 0x3b0   : > { %v1476_v2 = vrot.slane %v1466_v59, 4  ;;  %v1475_v7 = vperm.slane %v1471_v1, %v3342_v21  ;;  %v1488_v28 = vsel %vm748_vm2, %v1487_v29, %v1468_v10  ;;  %v1486_v24 = vperm.slane %v1482_v13, %v3342_v21 }
 0x3b1   : > { %v1464_v8 = vsel %vm748_vm2, 0.0, %v1463_v58  ;;  %v1492_v37 = vperm.slane %v1488_v28, %v3342_v21 }
 0x3b2   : > { %v1477_v22 = vsel %vm748_vm2, %v1476_v2, %v1464_v8  ;;  %v1495_v40 = vrot.slane %v1475_v7, 4 }
 0x3b3   : > { %v1481_v39 = vperm.slane %v1477_v22, %v3342_v21  ;;  %v1505_v1 = vrot.slane %v1492_v37, 4 }
 0x3b5   : > { %v1493_v58 = vrot.slane %v1481_v39, 4 }
 0x3fd   : > { %v1312_v43 = vpop.f32.mrf.mxu0 }
 0x3fe   : > { %v1319_v47 = vpack.c.bf16 %v1312_v43, %v1312_v43 }
 0x400   : > { %2612 = vmatmul.msk.bf16.vlgmr.msrb.gmra.mxu0 %vm1114_vm3, %v1319_v47 }
 0x401   : > { %v2777_v55 = vpop.permute.xlu2 %2776 }
 0x402   : > { %v2779_v56 = vunpack.i.h.bf16 %v2777_v55  ;;  %v2778_v57 = vunpack.i.l.bf16 %v2777_v55  ;;  %v1507_v55 = vrot.slane %v1486_v24, 4 }
 0x404   : > { %v1555_v62 = vrot.slane %v2779_v56, 4  ;;  %v1553_v14 = vrot.slane %v2778_v57, 4 }
 0x405   : > { %v1314_v20 = vpop.f32.mrf.mxu0 }
 0x406   : > { %v1554_v6 = vsel %vm748_vm2, %v1553_v14, %v2779_v56  ;;  %v1556_v46 = vsel %vm748_vm2, %v2778_v57, %v1555_v62 }
 0x407   : > { %v1560_v12 = vperm.slane %v1554_v6, %v3342_v21  ;;  %v1564_v11 = vperm.slane %v1556_v46, %v3342_v21 }
 0x409   : > { %v1565_v15 = vrot.slane %v1560_v12, 4  ;;  %v1568_v16 = vsel %vm748_vm2, %v1560_v12, %v1567_v63  ;;  %v1577_v17 = vrot.slane %v1564_v11, 4  ;;  %v1580_v19 = vsel %vm748_vm2, %v1564_v11, %v1579_v0 }
 0x40a   : > { %v1576_v3 = vperm.slane %v1568_v16, %v3352_v35  ;;  %v1588_v23 = vperm.slane %v1580_v19, %v3352_v35  ;;  %v1496_v0 = vsel %vm748_vm2, %v1481_v39, %v1495_v40  ;;  %v1508_v11 = vsel %vm748_vm2, %v1492_v37, %v1507_v55 }
 0x40b   : > { %v1566_v25 = vsel %vm748_vm2, %v1565_v15, %v1548_v53  ;;  %v1578_v26 = vsel %vm748_vm2, %v1577_v17, %v1552_v54  ;;  %v1274_v27 = vpop.f32.mrf.mxu2  ;;  %v1504_v16 = vperm.slane %v1496_v0, %v3352_v35  ;;  %v1494_v17 = vsel %vm748_vm2, %v1493_v58, %v1475_v7 }
 0x40c   : > { %v1572_v32 = vperm.slane %v1566_v25, %v3352_v35  ;;  %v1584_v33 = vperm.slane %v1578_v26, %v3352_v35  ;;  %v1591_v34 = vrot.slane %v1576_v3, 4  ;;  %v1595_v36 = vrot.slane %v1588_v23, 4 }
 0x40d   : > { %v1317_v38 = vpack.c.bf16 %v1274_v27, %v1274_v27  ;;  %v1516_v25 = vperm.slane %v1508_v11, %v3352_v35  ;;  %v1506_v26 = vsel %vm748_vm2, %v1505_v1, %v1486_v24  ;;  %v1500_v7 = vperm.slane %v1494_v17, %v3352_v35 }
 0x40e   : > { %v1589_v41 = vrot.slane %v1572_v32, 4  ;;  %v1592_v42 = vsel %vm748_vm2, 0.0, %v1591_v34  ;;  %v1593_v43 = vrot.slane %v1584_v33, 4  ;;  %v1596_v44 = vsel %vm748_vm2, 0.0, %v1595_v36 }
 0x40f   : > { %v1597_v45 = vsel %vm748_vm2, %v1591_v34, %v1572_v32  ;;  %v1602_v47 = vrot.slane %v1592_v42, 4  ;;  %v1608_v48 = vsel %vm748_vm2, %v1595_v36, %v1584_v33  ;;  %v1613_v49 = vrot.slane %v1596_v44, 4  ;;  %2610 = vmatmul.msk.bf16.vlgmr.msra.gmra.mxu2 %vm1114_vm3, %v1317_v38 }
 0x410   : > { %v1590_v51 = vsel %vm748_vm2, 0.0, %v1589_v41  ;;  %v1594_v52 = vsel %vm748_vm2, 0.0, %v1593_v43  ;;  %v1612_v53 = vperm.slane %v1608_v48, %v3342_v21  ;;  %v1601_v54 = vperm.slane %v1597_v45, %v3342_v21 }
 0x411   : > { %v1603_v56 = vsel %vm748_vm2, %v1602_v47, %v1590_v51  ;;  %v1614_v57 = vsel %vm748_vm2, %v1613_v49, %v1594_v52  ;;  %v1523_v40 = vrot.slane %v1504_v16, 4  ;;  %v1512_v41 = vperm.slane %v1506_v26, %v3352_v35 }
 0x412   : > { %v1607_v59 = vperm.slane %v1603_v56, %v3342_v21  ;;  %v1618_v60 = vperm.slane %v1614_v57, %v3342_v21  ;;  %v1621_v61 = vrot.slane %v1601_v54, 4  ;;  %v1633_v62 = vrot.slane %v1612_v53, 4 }
 0x413   : > { %v1276_v14 = vpop.f32.mrf.mxu2  ;;  %v1293_v63 = vpop.f32.mrf.mxu3  ;;  %v1519_v48 = vrot.slane %v1500_v7, 4  ;;  %v1521_v49 = vrot.slane %v1516_v25, 4 }
 0x414   : > { %v1318_v20 = vpack.c.bf16 %v1293_v63, %v1293_v63  ;;  %v1622_v2 = vsel %vm748_vm2, %v1607_v59, %v1621_v61  ;;  %v1634_v29 = vsel %vm748_vm2, %v1618_v60, %v1633_v62  ;;  %v1619_v6 = vrot.slane %v1607_v59, 4 }
 0x415   : > { %v1255_v46 = vpop.f32.mrf.mxu1  ;;  %v1630_v8 = vperm.slane %v1622_v2, %v3352_v35  ;;  %v1642_v10 = vperm.slane %v1634_v29, %v3352_v35  ;;  %v1631_v12 = vrot.slane %v1618_v60, 4  ;;  %v1520_v55 = vsel %vm748_vm2, %v1512_v41, %v1519_v48 }
 0x416   : > { %v1316_v13 = vpack.c.bf16 %v1255_v46, %v1255_v46  ;;  %2611 = vmatmul.msk.bf16.vlgmr.msra.gmra.mxu3 %vm1114_vm3, %v1318_v20  ;;  %v1620_v15 = vsel %vm748_vm2, %v1619_v6, %v1601_v54  ;;  %v1517_v54 = vrot.slane %v1512_v41, 4  ;;  %v1522_v56 = vsel %vm748_vm2, %v1521_v49, %v1504_v16 }
 0x417   : > { %v1647_v19 = vrot.slane %v1642_v10, 4  ;;  %v1649_v22 = vrot.slane %v1630_v8, 4  ;;  %v1626_v28 = vperm.slane %v1620_v15, %v3352_v35  ;;  %v1632_v3 = vsel %vm748_vm2, %v1631_v12, %v1612_v53 }
 0x418   : > { %2609 = vmatmul.msk.bf16.vlgmr.msra.gmra.mxu1 %vm1114_vm3, %v1316_v13  ;;  %v1638_v23 = vperm.slane %v1632_v3, %v3352_v35  ;;  %v1524_v53 = vsel %vm748_vm2, %v1516_v25, %v1523_v40  ;;  %v1518_v58 = vsel %vm748_vm2, %v1517_v54, %v1500_v7  ;;  %v1526_v59 = vpack.c.bf16 %v1520_v55, %v1520_v55 }
 0x419   : > { %v1648_v27 = vsel %vm748_vm2, %v1647_v19, %v1630_v8  ;;  %v1650_v32 = vsel %vm748_vm2, %v1642_v10, %v1649_v22  ;;  %v1645_v33 = vrot.slane %v1626_v28, 4  ;;  %v1528_v57 = vpack.c.bf16 %v1524_v53, %v1524_v53 }
 0x41a   : > { %v1653_v34 = vpack.c.bf16 %v1648_v27, %v1648_v27  ;;  %v1654_v36 = vpack.c.bf16 %v1650_v32, %v1650_v32  ;;  %v1643_v37 = vrot.slane %v1638_v23, 4  ;;  %v1527_v60 = vpack.c.bf16 %v1522_v56, %v1522_v56 }
 0x41b   : > { %v1295_v38 = vpop.f32.mrf.mxu3  ;;  %v1646_v39 = vsel %vm748_vm2, %v1638_v23, %v1645_v33  ;;  %v1525_v61 = vpack.c.bf16 %v1518_v58, %v1518_v58 }
 0x41c   : > { %v1823_v42 = vsel %vm1114_vm3, %v1653_v34, 0  ;;  %v1842_v24 = vsel %vm1114_vm3, %v1654_v36, 0  ;;  %v1644_v43 = vsel %vm748_vm2, %v1643_v37, %v1626_v28  ;;  %v1652_v44 = vpack.c.bf16 %v1646_v39, %v1646_v39  ;;  %v2846_v39 = vld [vmem:[#allocation11] sm:$0xff] }
 0x41d   : > { %v1257_v45 = vpop.f32.mrf.mxu1  ;;  %1832 = vmatpush.bf16.xpose.msrb.mxu3 %v1823_v42  ;;  %1851 = vmatpush.bf16.xpose.msra.mxu0 %v1842_v24  ;;  %v1651_v47 = vpack.c.bf16 %v1644_v43, %v1644_v43 }
 0x41e   : > { %v1804_v51 = vsel %vm1114_vm3, %v1652_v44, 0 }
 0x41f   : > { %v1785_v52 = vsel %vm1114_vm3, %v1651_v47, 0  ;;  %1813 = vmatpush.bf16.xpose.msrb.mxu2 %v1804_v51 }
 0x420   : > { %1794 = vmatpush.bf16.xpose.msrb.mxu1 %v1785_v52 }
 0x424   : > { %2616 = vmatmul.msk.bf16.vlgmr.msra.gmra.mxu0 %vm1114_vm3, %v1528_v57 }
 0x426   : > { %2614 = vmatmul.msk.bf16.vlgmr.msrb.gmra.mxu2 %vm1114_vm3, %v1526_v59  ;;  %2615 = vmatmul.msk.bf16.vlgmr.msrb.gmra.mxu3 %vm1114_vm3, %v1527_v60 }
 0x428   : > { %2613 = vmatmul.msk.bf16.vlgmr.msrb.gmra.mxu1 %vm1114_vm3, %v1525_v61 }
 0x47d   : > { %v1392_v62 = vpop.f32.mrf.mxu0 }
 0x47e   : > { %v1401_v10 = vsel %vm709_vm1, %v1392_v62, 0.0 }
 0x485   : > { %v1394_v14 = vpop.f32.mrf.mxu0 }
 0x492   : > { %v1354_v63 = vpop.f32.mrf.mxu2 }
 0x493   : > { %v1397_v20 = vsel %vm709_vm1, %v1354_v63, 0.0 }
 0x495   : > { %v1335_v0 = vpop.f32.mrf.mxu1 }
 0x496   : > { %v1396_v1 = vsel %vm709_vm1, %v1335_v0, 0.0 }
 0x497   : > { %v1398_v2 = vadd.f32 %v1397_v20, %v1396_v1 }
 0x499   : > { %v1373_v29 = vpop.f32.mrf.mxu3 }
 0x49a   : > { %v1356_v6 = vpop.f32.mrf.mxu2  ;;  %v1399_v46 = vsel %vm709_vm1, %v1373_v29, 0.0 }
 0x49b   : > { %v1400_v8 = vadd.f32 %v1399_v46, %v1398_v2 }
 0x49d   : > { %v1402_v12 = vadd.f32 %v1401_v10, %v1400_v8  ;;  %v1337_v11 = vpop.f32.mrf.mxu1 }
 0x49f   : > { %1404 = vst.msk [vmem:[#allocation2] sm:$0xff] %vm709_vm1, %v1402_v12 }
 0x4a1   : > { %v1375_v13 = vpop.f32.mrf.mxu3  ;;  %v1853_v15 = vpop.f32.mrf.mxu0 }
 0x4a2   : > { %v1854_v26 = vadd.f32 %v1853_v15, %v3434_v50 }
 0x4a4   : > { %v1866_v7 = vsel %vm1114_vm3, %v1854_v26, -inf }
 0x4a5   : > { %v1796_v16 = vpop.f32.mrf.mxu1 }
 0x4a6   : > { %v1797_v17 = vadd.f32 %v1796_v16, %v3434_v50  ;;  %v2059_v37 = vld [vmem:[#allocation2] sm:$0xff] }
 0x4a8   : > { %v1857_v19 = vsel %vm1114_vm3, %v1797_v17, -inf }
 0x4a9   : > { %v1815_v22 = vpop.f32.mrf.mxu2  ;;  %v1834_v28 = vpop.f32.mrf.mxu3  ;;  %1858 = vmax.xlane.f32.xlu0 %v1857_v19 }
 0x4aa   : > { %v1816_v3 = vadd.f32 %v1815_v22, %v3434_v50  ;;  %v1835_v23 = vadd.f32 %v1834_v28, %v3434_v50  ;;  %v1855_v25 = vpop.f32.mrf.mxu0  ;;  %v3675_v50 = vld [vmem:[%s3895_s18] ss:$0 sm:$0xff] }
 0x4ab   : > { %v2065_v38 = vadd.f32 %v3675_v50, %v2059_v37 }
 0x4ac   : > { %v1863_v27 = vsel %vm1114_vm3, %v1835_v23, -inf  ;;  %v1860_v32 = vsel %vm1114_vm3, %v1816_v3, -inf }
 0x4ad   : > { %1864 = vmax.xlane.f32.xlu2 %v1863_v27  ;;  %1861 = vmax.xlane.f32.xlu1 %v1860_v32  ;;  %v1798_v33 = vpop.f32.mrf.mxu1  ;;  %v3678_v40 = vadd.f32 %v2846_v39, %v2065_v38 }
 0x4af   : > { %v2071_v41 = vsel %vm709_vm1, %v3678_v40, 0.0 }
 0x4b1   : > { %v1817_v34 = vpop.f32.mrf.mxu2  ;;  %v1836_v36 = vpop.f32.mrf.mxu3  ;;  %1867 = vmax.xlane.f32.xlu0 %v1866_v7 }
 0x4c5   : > { %2781 = vrot.lane.b32.xlu0 %v3471_v31, %s3054_s25 }
 0x4c6   : > { %2786 = vrot.lane.b32.xlu1 %v3533_v4, %s3054_s25 }
 0x4f0   : > { %2072 = vadd.xlane.f32.xlu1 %v2071_v41 }
 0x51c   : > { %v1859_v31 = vpop.xlane.xlu0 %1858 }
 0x51d   : > { %v1869_v47 = vsub.f32 %v1797_v17, %v1859_v31 }
 0x51f   : > { %v1873_v48 = vmul.f32 1.442695, %v1869_v47 }
 0x520   : > { %v1865_v42 = vpop.xlane.xlu2 %1864  ;;  %v1862_v24 = vpop.xlane.xlu1 %1861 }
 0x521   : > { %v1871_v4 = vsub.f32 %v1835_v23, %v1865_v42  ;;  %v1870_v43 = vsub.f32 %v1816_v3, %v1862_v24 }
 0x523   : > { %v1877_v44 = vmul.f32 1.442695, %v1871_v4  ;;  %v1875_v45 = vmul.f32 1.442695, %v1870_v43 }
 0x524   : > { %v1868_v49 = vpop.xlane.xlu0 %1867 }
 0x525   : > { %2814 = vpow2.f32 %v1877_v44  ;;  %v1872_v52 = vsub.f32 %v1854_v26, %v1868_v49 }
 0x526   : > { %2816 = vpow2.f32 %v1875_v45 }
 0x527   : > { %2818 = vpow2.f32 %v1873_v48  ;;  %v1879_v56 = vmul.f32 1.442695, %v1872_v52 }
 0x529   : > { %2820 = vpow2.f32 %v1879_v56 }
 0x52b   : > { %v3682_v51 = vpop.eup %2814 }
 0x52c   : > { %v3684_v53 = vpop.eup %2816  ;;  %v1887_v54 = vsel %vm1114_vm3, %v3682_v51, 0.0 }
 0x52d   : > { %v1884_v55 = vsel %vm1114_vm3, %v3684_v53, 0.0  ;;  %1888 = vadd.xlane.f32.xlu0 %v1887_v54  ;;  %v3690_v57 = vpop.eup %2818 }
 0x52e   : > { %1885 = vadd.xlane.f32.xlu2 %v1884_v55  ;;  %v1881_v58 = vsel %vm1114_vm3, %v3690_v57, 0.0 }
 0x52f   : > { %v3694_v14 = vpop.eup %2820 }
 0x530   : > { %v1890_v8 = vsel %vm1114_vm3, %v3694_v14, 0.0 }
 0x536   : > { %1882 = vadd.xlane.f32.xlu2 %v1881_v58 }
 0x537   : > { %v2782_v59 = vpop.permute.xlu0 %2781 }
 0x538   : > { %v2784_v60 = vunpack.i.h.bf16 %v2782_v59  ;;  %v2783_v61 = vunpack.i.l.bf16 %v2782_v59  ;;  %v2787_v62 = vpop.permute.xlu1 %2786 }
 0x539   : > { %v2789_v63 = vunpack.i.h.bf16 %v2787_v62  ;;  %v2788_v0 = vunpack.i.l.bf16 %v2787_v62 }
 0x53a   : > { %v1669_v1 = vrot.slane %v2784_v60, 4  ;;  %v1667_v20 = vrot.slane %v2783_v61, 4 }
 0x53b   : > { %v1681_v2 = vrot.slane %v2789_v63, 4  ;;  %v1679_v29 = vrot.slane %v2788_v0, 4 }
 0x53c   : > { %v1668_v6 = vsel %vm748_vm2, %v1667_v20, %v2784_v60  ;;  %v1670_v46 = vsel %vm748_vm2, %v2783_v61, %v1669_v1 }
 0x53d   : > { %v1674_v10 = vperm.slane %v1668_v6, %v3342_v21  ;;  %v1678_v12 = vperm.slane %v1670_v46, %v3342_v21  ;;  %v1680_v11 = vsel %vm748_vm2, %v1679_v29, %v2789_v63  ;;  %v1682_v13 = vsel %vm748_vm2, %v2788_v0, %v1681_v2 }
 0x53e   : > { %v1686_v15 = vperm.slane %v1680_v11, %v3342_v21  ;;  %v1690_v16 = vperm.slane %v1682_v13, %v3342_v21  ;;  %1891 = vadd.xlane.f32.xlu2 %v1890_v8 }
 0x53f   : > { %v1693_v17 = vrot.slane %v1674_v10, 4  ;;  %v1705_v19 = vrot.slane %v1678_v12, 4 }
 0x540   : > { %v1691_v22 = vrot.slane %v1686_v15, 4  ;;  %v1703_v28 = vrot.slane %v1690_v16, 4 }
 0x541   : > { %v1694_v3 = vsel %vm748_vm2, %v1686_v15, %v1693_v17  ;;  %v1706_v23 = vsel %vm748_vm2, %v1690_v16, %v1705_v19 }
 0x542   : > { %v1692_v25 = vsel %vm748_vm2, %v1691_v22, %v1674_v10  ;;  %v1702_v26 = vperm.slane %v1694_v3, %v3352_v35  ;;  %v1704_v27 = vsel %vm748_vm2, %v1703_v28, %v1678_v12  ;;  %v1714_v32 = vperm.slane %v1706_v23, %v3352_v35 }
 0x543   : > { %v1698_v33 = vperm.slane %v1692_v25, %v3352_v35  ;;  %v1710_v7 = vperm.slane %v1704_v27, %v3352_v35 }
 0x544   : > { %v1717_v34 = vrot.slane %v1702_v26, 4  ;;  %v1721_v36 = vrot.slane %v1714_v32, 4 }
 0x545   : > { %v1715_v37 = vrot.slane %v1698_v33, 4  ;;  %v1719_v38 = vrot.slane %v1710_v7, 4 }
 0x546   : > { %v1718_v39 = vsel %vm748_vm2, 0.0, %v1717_v34  ;;  %v1722_v41 = vsel %vm748_vm2, 0.0, %v1721_v36  ;;  %v1723_v31 = vsel %vm748_vm2, %v1717_v34, %v1698_v33  ;;  %v1734_v42 = vsel %vm748_vm2, %v1721_v36, %v1710_v7 }
 0x547   : > { %v1716_v24 = vsel %vm748_vm2, 0.0, %v1715_v37  ;;  %v1720_v4 = vsel %vm748_vm2, 0.0, %v1719_v38  ;;  %v1728_v43 = vrot.slane %v1718_v39, 4  ;;  %v1738_v44 = vperm.slane %v1734_v42, %v3342_v21 }
 0x548   : > { %v1739_v45 = vrot.slane %v1722_v41, 4  ;;  %v1727_v47 = vperm.slane %v1723_v31, %v3342_v21 }
 0x549   : > { %v1729_v48 = vsel %vm748_vm2, %v1728_v43, %v1716_v24  ;;  %v1759_v49 = vrot.slane %v1738_v44, 4 }
 0x54a   : > { %v1733_v52 = vperm.slane %v1729_v48, %v3342_v21  ;;  %v1740_v54 = vsel %vm748_vm2, %v1739_v45, %v1720_v4  ;;  %v1747_v55 = vrot.slane %v1727_v47, 4  ;;  %v3055_v45 = vmov 32.0  }
 0x54b   : > { %v1744_v56 = vperm.slane %v1740_v54, %v3342_v21 }
 0x54c   : > { %v1748_v58 = vsel %vm748_vm2, %v1733_v52, %v1747_v55  ;;  %v1745_v59 = vrot.slane %v1733_v52, 4 }
 0x54d   : > { %v1756_v60 = vperm.slane %v1748_v58, %v3352_v35  ;;  %v1760_v61 = vsel %vm748_vm2, %v1744_v56, %v1759_v49  ;;  %v1757_v62 = vrot.slane %v1744_v56, 4 }
 0x54e   : > { %v1768_v63 = vperm.slane %v1760_v61, %v3352_v35  ;;  %v1746_v0 = vsel %vm748_vm2, %v1745_v59, %v1727_v47 }
 0x54f   : > { %v1775_v1 = vrot.slane %v1756_v60, 4  ;;  %v1752_v20 = vperm.slane %v1746_v0, %v3352_v35  ;;  %v1758_v2 = vsel %vm748_vm2, %v1757_v62, %v1738_v44 }
 0x550   : > { %v1773_v29 = vrot.slane %v1768_v63, 4  ;;  %v1764_v21 = vperm.slane %v1758_v2, %v3352_v35 }
 0x551   : > { %v1776_v6 = vsel %vm748_vm2, %v1768_v63, %v1775_v1  ;;  %v1771_v46 = vrot.slane %v1752_v20, 4 }
 0x552   : > { %v1774_v8 = vsel %vm748_vm2, %v1773_v29, %v1756_v60  ;;  %v1780_v10 = vpack.c.bf16 %v1776_v6, %v1776_v6  ;;  %v1769_v12 = vrot.slane %v1764_v21, 4 }
 0x553   : > { %v1779_v11 = vpack.c.bf16 %v1774_v8, %v1774_v8  ;;  %v1772_v13 = vsel %vm748_vm2, %v1764_v21, %v1771_v46 }
 0x554   : > { %v1966_v15 = vsel %vm1242_vm5, %v1780_v10, 0  ;;  %v1770_v16 = vsel %vm748_vm2, %v1769_v12, %v1752_v20  ;;  %v1778_v17 = vpack.c.bf16 %v1772_v13, %v1772_v13  ;;  %v2847_v13 = vld [vmem:[#allocation11 + $0x8] sm:$0xff] }
 0x555   : > { %v1947_v19 = vsel %vm1242_vm5, %v1779_v11, 0  ;;  %1975 = vmatpush.bf16.msrb.mxu0 %v1966_v15  ;;  %v1777_v22 = vpack.c.bf16 %v1770_v16, %v1770_v16 }
 0x556   : > { %1956 = vmatpush.bf16.msra.mxu3 %v1947_v19  ;;  %v1928_v35 = vsel %vm1242_vm5, %v1778_v17, 0 }
 0x557   : > { %v1909_v28 = vsel %vm1242_vm5, %v1777_v22, 0  ;;  %1937 = vmatpush.bf16.msra.mxu2 %v1928_v35 }
 0x558   : > { %1918 = vmatpush.bf16.msra.mxu1 %v1909_v28 }
 0x559   : > { %2043 = vmatpush.bf16.msra.mxu0 %v3539_v5 }
 0x55a   : > { %2027 = vmatpush.bf16.msrb.mxu3 %v3558_v18 }
 0x55b   : > { %2011 = vmatpush.bf16.msrb.mxu2 %v3546_v9 }
 0x55c   : > { %1995 = vmatpush.bf16.msrb.mxu1 %v3566_v30 }
 0x563   : > { %v2073_v8 = vpop.xlane.xlu1 %2072 }
 0x5a0   : > { %v1889_v3 = vpop.xlane.xlu0 %1888 }
 0x5a1   : > { %v1886_v23 = vpop.xlane.xlu2 %1885  ;;  %2822 = vrcp.f32 %v1889_v3 }
 0x5a2   : > { %2824 = vrcp.f32 %v1886_v23 }
 0x5a7   : > { %v2823_v25 = vpop.eup %2822 }
 0x5a8   : > { %v2825_v26 = vpop.eup %2824  ;;  %v1899_v27 = vmul.f32 %v2823_v25, %v3682_v51 }
 0x5a9   : > { %v1898_v5 = vmul.f32 %v2825_v26, %v3684_v53  ;;  %v1883_v32 = vpop.xlane.xlu2 %1882 }
 0x5aa   : > { %v1903_v33 = vpack.c.bf16 %v1899_v27, %v1899_v27  ;;  %2826 = vrcp.f32 %v1883_v32  ;;  %v2664_v27 = vld [vmem:[%s3303_s2 + $0x8] sm:$0xff]  ;;  %v2663_v32 = vld [vmem:[%s3303_s2] sm:$0xff]  ;;  %s3896_s2 = scalar_lea.vmem [#allocation8], %s3265_s19 }
 0x5ab   : > { %v1902_v7 = vpack.c.bf16 %v1898_v5, %v1898_v5 }
 0x5ac   : > { %2619 = vmatmul.msk.bf16.vlgmr.msra.gmra.mxu3 %vm1114_vm3, %v1903_v33 }
 0x5ad   : > { %2618 = vmatmul.msk.bf16.vlgmr.msra.gmra.mxu2 %vm1114_vm3, %v1902_v7 }
 0x5b0   : > { %v2827_v9 = vpop.eup %2826 }
 0x5b1   : > { %v1897_v18 = vmul.f32 %v2827_v9, %v3690_v57  ;;  %v1892_v30 = vpop.xlane.xlu2 %1891 }
 0x5b2   : > { %2828 = vrcp.f32 %v1892_v30 }
 0x5b3   : > { %v1901_v34 = vpack.c.bf16 %v1897_v18, %v1897_v18  ;;  %2830 = vrcp.f32 %v3055_v45 }
 0x5b5   : > { %2617 = vmatmul.msk.bf16.vlgmr.msra.gmra.mxu1 %vm1114_vm3, %v1901_v34 }
 0x5b6   : > { %2162 = vmatpush.bf16.msra.mxu1 %v2664_v27  ;;  %v2667_v27 = vld [vmem:[%s3313_s23 + $0x10] sm:$0xff] }
 0x5b8   : > { %v2829_v36 = vpop.eup %2828 }
 0x5b9   : > { %v1900_v51 = vmul.f32 %v2829_v36, %v3694_v14  ;;  %v2831_v47 = vpop.eup %2830 }
 0x5ba   : > { %v2078_v49 = vmul.f32 32.0, %v2831_v47  ;;  %vm2082_vm6 = vweird.f32 %v2831_v47  ;;  %2163 = vmatpush.bf16.msra.mxu1 %v2663_v32 }
 0x5bb   : > { %v1904_v53 = vpack.c.bf16 %v1900_v51, %v1900_v51 }
 0x5bc   : > { %v2079_v55 = vsub.f32 1.0, %v2078_v49 }
 0x5bd   : > { %2620 = vmatmul.msk.bf16.vlgmr.msrb.gmra.mxu0 %vm1114_vm3, %v1904_v53 }
 0x5be   : > { %v2080_v0 = vmul.f32 %v2831_v47, %v2079_v55 }
 0x5c0   : > { %v2081_v21 = vadd.f32 %v2831_v47, %v2080_v0 }
 0x5c2   : > { %v3763_v46 = vsel %vm2082_vm6, %v2831_v47, %v2081_v21 }
 0x5c3   : > { %v2084_v12 = vmul.f32 %v3763_v46, %v2073_v8 }
 0x5c5   : > { %v2086_v16 = vsub.f32 %v3678_v40, %v2084_v12 }
 0x5c7   : > { %v2088_v19 = vmul.f32 %v2086_v16, %v2086_v16 }
 0x5c9   : > { %v2090_v22 = vsel %vm709_vm1, %v2088_v19, 0.0 }
 0x62f   : > { %v1958_v37 = vpop.f32.mrf.mxu3 }
 0x630   : > { %v1939_v38 = vpop.f32.mrf.mxu2  ;;  %v1983_v39 = vpack.c.bf16 %v1958_v37, %v1958_v37 }
 0x631   : > { %v1982_v41 = vpack.c.bf16 %v1939_v38, %v1939_v38 }
 0x632   : > { %v1920_v31 = vpop.f32.mrf.mxu1  ;;  %2623 = vmatmul.msk.bf16.vlgmr.msrb.gmra.mxu3 %vm1114_vm3, %v1983_v39 }
 0x633   : > { %v1981_v42 = vpack.c.bf16 %v1920_v31, %v1920_v31  ;;  %2622 = vmatmul.msk.bf16.vlgmr.msrb.gmra.mxu2 %vm1114_vm3, %v1982_v41 }
 0x635   : > { %2621 = vmatmul.msk.bf16.vlgmr.msrb.gmra.mxu1 %vm1114_vm3, %v1981_v42  ;;  %v2792_v42 = vld [vmem:[%s3896_s2] ss:$0 sm:$0xff] }
 0x637   : > { %v1960_v57 = vpop.f32.mrf.mxu3 }
 0x638   : > { %v1941_v24 = vpop.f32.mrf.mxu2 }
 0x63a   : > { %v1922_v4 = vpop.f32.mrf.mxu1  ;;  %v1977_v43 = vpop.f32.mrf.mxu0 }
 0x63b   : > { %v1984_v14 = vpack.c.bf16 %v1977_v43, %v1977_v43  ;;  %v2793_v43 = vld [vmem:[%s3897_s13] ss:$0 sm:$0xff] }
 0x63d   : > { %2624 = vmatmul.msk.bf16.vlgmr.msra.gmra.mxu0 %vm1114_vm3, %v1984_v14 }
 0x642   : > { %v1979_v44 = vpop.f32.mrf.mxu0 }
 0x6b2   : > { %v1997_v48 = vpop.f32.mrf.mxu1 }
 0x6b3   : > { %v2049_v56 = vsel %vm709_vm1, %v1997_v48, 0.0 }
 0x6b5   : > { %v2029_v52 = vpop.f32.mrf.mxu3 }
 0x6b6   : > { %v2013_v54 = vpop.f32.mrf.mxu2  ;;  %v2052_v60 = vsel %vm709_vm1, %v2029_v52, 0.0  ;;  %v3056_v52 = vmov 1.4142135  }
 0x6b7   : > { %v2050_v58 = vsel %vm709_vm1, %v2013_v54, 0.0 }
 0x6b8   : > { %v2051_v59 = vadd.f32 %v2050_v58, %v2049_v56 }
 0x6ba   : > { %v2053_v61 = vadd.f32 %v2052_v60, %v2051_v59  ;;  %v1999_v62 = vpop.f32.mrf.mxu1  ;;  %v2045_v63 = vpop.f32.mrf.mxu0  ;;  %v2794_v60 = vld [vmem:[%s664_s24] ss:$0 sm:$0xff] }
 0x6bb   : > { %v2054_v1 = vsel %vm709_vm1, %v2045_v63, 0.0 }
 0x6bc   : > { %v2055_v20 = vadd.f32 %v2054_v1, %v2053_v61 }
 0x6bd   : > { %v2031_v2 = vpop.f32.mrf.mxu3 }
 0x6be   : > { %2058 = vst.msk [vmem:[#allocation2 + $0x8] sm:$0xff] %vm709_vm1, %v2055_v20  ;;  %v2015_v29 = vpop.f32.mrf.mxu2 }
 0x6c2   : > { %v2047_v6 = vpop.f32.mrf.mxu0 }
 0x6c5   : > { %v2060_v10 = vld [vmem:[#allocation2 + $0x8] sm:$0xff] }
 0x6c6   : > { %v2066_v11 = vadd.f32 %v3675_v50, %v2060_v10 }
 0x6c8   : > { %v2068_v15 = vadd.f32 %v2847_v13, %v2066_v11 }
 0x6ca   : > { %v2074_v17 = vsel %vm709_vm1, %v2068_v15, 0.0 }
 0x6cb   : > { %2075 = vadd.xlane.f32.xlu2 %v2074_v17 }
 0x6d3   : > { %2091 = vadd.xlane.f32.xlu2 %v2090_v22 }
 0x73e   : > { %v2076_v35 = vpop.xlane.xlu2 %2075 }
 0x73f   : > { %v2085_v28 = vmul.f32 %v3763_v46, %v2076_v35 }
 0x741   : > { %v2087_v3 = vsub.f32 %v2068_v15, %v2085_v28  ;;  %v2668_v28 = vld [vmem:[%s3313_s23 + $0x18] sm:$0xff] }
 0x742   : > { %2310 = vmatpush.bf16.msra.mxu2 %v2668_v28 }
 0x743   : > { %v2089_v23 = vmul.f32 %v2087_v3, %v2087_v3 }
 0x745   : > { %v2093_v50 = vsel %vm709_vm1, %v2089_v23, 0.0 }
 0x746   : > { %2094 = vadd.xlane.f32.xlu2 %v2093_v50  ;;  %v2092_v25 = vpop.xlane.xlu2 %2091  ;;  %2311 = vmatpush.bf16.msra.mxu2 %v2667_v27 }
 0x747   : > { %v2096_v40 = vmul.f32 %v2092_v25, %v3763_v46 }
 0x749   : > { %v2098_v26 = vadd.f32 1e-05, %v2096_v40 }
 0x74b   : > { %2832 = vrsqrt.f32 %v2098_v26  ;;  %vm2106_vm8 = vweird.f32 %v2098_v26 }
 0x751   : > { %v2833_v5 = vpop.eup %2832 }
 0x752   : > { %v2101_v33 = vmul.f32 %v2833_v5, %v2098_v26  ;;  %vm2107_vm7 = vweird.f32 %v2833_v5 }
 0x753   : > { %vm2108_vm9 = vmor %vm2106_vm8, %vm2107_vm7  ;;  %vm2302_vm7 = vcmask 523264  }
 0x754   : > { %v2102_v7 = vmul.f32 %v2833_v5, %v2101_v33 }
 0x756   : > { %v2103_v34 = vmul.f32 0.5, %v2102_v7 }
 0x758   : > { %v2104_v36 = vsub.f32 1.5, %v2103_v34 }
 0x75a   : > { %v2105_v53 = vmul.f32 %v2833_v5, %v2104_v36 }
 0x75c   : > { %v2109_v39 = vsel %vm2108_vm9, %v2833_v5, %v2105_v53 }
 0x75d   : > { %v2120_v57 = vmul.f32 %v2109_v39, %v2086_v16 }
 0x75f   : > { %v2125_v14 = vmul.f32 %v2792_v42, %v2120_v57 }
 0x761   : > { %v3783_v47 = vadd.f32 %v2793_v43, %v2125_v14 }
 0x7b9   : > { %v2095_v9 = vpop.xlane.xlu2 %2094 }
 0x7ba   : > { %v2097_v18 = vmul.f32 %v2095_v9, %v3763_v46 }
 0x7bc   : > { %v2099_v30 = vadd.f32 1e-05, %v2097_v18 }
 0x7be   : > { %2834 = vrsqrt.f32 %v2099_v30  ;;  %vm2116_vm11 = vweird.f32 %v2099_v30 }
 0x7bf   : > { %2836 = vrcp.f32 %v3056_v52 }
 0x7c4   : > { %v2835_v51 = vpop.eup %2834 }
 0x7c5   : > { %v2111_v37 = vmul.f32 %v2835_v51, %v2099_v30  ;;  %vm2117_vm10 = vweird.f32 %v2835_v51  ;;  %v2837_v54 = vpop.eup %2836  ;;  %v2666_v30 = vld [vmem:[%s3313_s23 + $0x8] sm:$0xff] }
 0x7c6   : > { %vm2118_vm12 = vmor %vm2116_vm11, %vm2117_vm10  ;;  %v2173_v55 = vmul.f32 1.4142135, %v2837_v54  ;;  %vm2177_vm13 = vweird.f32 %v2837_v54  ;;  %2312 = vmatpush.bf16.msra.mxu2 %v2666_v30 }
 0x7c7   : > { %v2112_v38 = vmul.f32 %v2835_v51, %v2111_v37 }
 0x7c8   : > { %v2174_v56 = vsub.f32 1.0, %v2173_v55 }
 0x7c9   : > { %v2113_v41 = vmul.f32 0.5, %v2112_v38  ;;  %v2665_v38 = vld [vmem:[%s3313_s23] sm:$0xff] }
 0x7ca   : > { %v2175_v58 = vmul.f32 %v2837_v54, %v2174_v56  ;;  %2313 = vmatpush.bf16.msra.mxu2 %v2665_v38 }
 0x7cb   : > { %v2114_v31 = vsub.f32 1.5, %v2113_v41 }
 0x7cc   : > { %v2176_v59 = vadd.f32 %v2837_v54, %v2175_v58 }
 0x7cd   : > { %v2115_v24 = vmul.f32 %v2835_v51, %v2114_v31 }
 0x7ce   : > { %v2178_v62 = vsel %vm2177_vm13, %v2837_v54, %v2176_v59 }
 0x7cf   : > { %v2119_v4 = vsel %vm2118_vm12, %v2835_v51, %v2115_v24 }
 0x7d0   : > { %v2121_v44 = vmul.f32 %v2119_v4, %v2087_v3 }
 0x7d2   : > { %v2126_v45 = vmul.f32 %v2792_v42, %v2121_v44 }
 0x7d4   : > { %v3785_v48 = vadd.f32 %v2793_v43, %v2126_v45 }
 0x7d6   : > { %v2132_v49 = vpack.c.bf16 %v3785_v48, %v3783_v47 }
 0x7d8   : > { %2633 = vmatmul.msk.bf16.vlgmr.msra.gmra.mxu1 %vm709_vm1, %v2132_v49 }
 0x855   : > { %v2165_v61 = vpop.f32.mrf.mxu1 }
 0x856   : > { %v3795_v63 = vadd.f32 %v2794_v60, %v2165_v61 }
 0x858   : > { %v3798_v0 = vmul.f32 %v2178_v62, %v3795_v63 }
 0x85a   : > { %v2181_v1 = vmul.f32 %v3798_v0, %v3798_v0 }
 0x85c   : > { %v2182_v20 = vmin.f32 %v2181_v1, 16.0 }
 0x85d   : > { %v2167_v2 = vpop.f32.mrf.mxu1 }
 0x85e   : > { %v2183_v29 = vmul.f32 2.1237322e-06, %v2182_v20  ;;  %v2194_v21 = vmul.f32 3.8918573e-05, %v2182_v20  ;;  %v3802_v6 = vadd.f32 %v2794_v60, %v2167_v2 }
 0x860   : > { %v2184_v8 = vadd.f32 0.00028619796, %v2183_v29  ;;  %v2195_v10 = vadd.f32 0.001143296, %v2194_v21  ;;  %v3805_v12 = vmul.f32 %v2178_v62, %v3802_v6 }
 0x862   : > { %v2196_v11 = vmul.f32 %v2195_v10, %v2182_v20  ;;  %v2221_v13 = vmul.f32 %v3805_v12, %v3805_v12  ;;  %v2185_v15 = vmul.f32 %v2184_v8, %v2182_v20 }
 0x864   : > { %v2197_v16 = vadd.f32 0.014752088, %v2196_v11  ;;  %v2222_v17 = vmin.f32 %v2221_v13, 16.0  ;;  %v2186_v3 = vadd.f32 0.0036580483, %v2185_v15 }
 0x866   : > { %v2198_v19 = vmul.f32 %v2197_v16, %v2182_v20  ;;  %v2223_v22 = vmul.f32 2.1237322e-06, %v2222_v17  ;;  %v2234_v35 = vmul.f32 3.8918573e-05, %v2222_v17  ;;  %v2187_v32 = vmul.f32 %v2186_v3, %v2182_v20 }
 0x868   : > { %v2199_v23 = vadd.f32 0.112945676, %v2198_v19  ;;  %v2224_v50 = vadd.f32 0.00028619796, %v2223_v22  ;;  %v2235_v25 = vadd.f32 0.001143296, %v2234_v35 }
 0x869   : > { %v2188_v36 = vadd.f32 0.05243302, %v2187_v32 }
 0x86a   : > { %v2200_v40 = vmul.f32 %v2199_v23, %v2182_v20  ;;  %v2225_v26 = vmul.f32 %v2224_v50, %v2222_v17  ;;  %v2236_v5 = vmul.f32 %v2235_v25, %v2222_v17  ;;  %v2170_v50 = vmul.f32 0.5, %v3795_v63 }
 0x86b   : > { %v2189_v41 = vmul.f32 %v2188_v36, %v2182_v20  ;;  %v2171_v25 = vmul.f32 0.5, %v3802_v6 }
 0x86c   : > { %v2201_v33 = vadd.f32 0.4994258, %v2200_v40  ;;  %v2226_v7 = vadd.f32 0.0036580483, %v2225_v26  ;;  %v2237_v9 = vadd.f32 0.014752088, %v2236_v5 }
 0x86d   : > { %v2190_v4 = vadd.f32 0.18741608, %v2189_v41 }
 0x86e   : > { %v2202_v18 = vmul.f32 %v2201_v33, %v2182_v20  ;;  %v2238_v34 = vmul.f32 %v2237_v9, %v2222_v17  ;;  %v2227_v53 = vmul.f32 %v2226_v7, %v2222_v17 }
 0x86f   : > { %v2191_v49 = vmul.f32 %v2190_v4, %v2182_v20 }
 0x870   : > { %v2203_v51 = vadd.f32 1.0, %v2202_v18  ;;  %v2239_v37 = vadd.f32 0.112945676, %v2238_v34  ;;  %v2228_v31 = vadd.f32 0.05243302, %v2227_v53 }
 0x871   : > { %v2192_v59 = vadd.f32 1.1283791, %v2191_v49 }
 0x872   : > { %2838 = vrcp.f32 %v2203_v51  ;;  %v2240_v39 = vmul.f32 %v2239_v37, %v2222_v17  ;;  %v2229_v14 = vmul.f32 %v2228_v31, %v2222_v17  ;;  %v2215_v54 = vand.u32 2147483648, %v2203_v51 }
 0x873   : > { %v2213_v56 = vand.u32 2147483647, %v2203_v51  ;;  %vm2209_vm15 = vweird.f32 %v2203_v51  ;;  %v2193_v21 = vmul.f32 %v2192_v59, %v3798_v0 }
 0x874   : > { %v2241_v42 = vadd.f32 0.4994258, %v2240_v39  ;;  %v2230_v55 = vadd.f32 0.18741608, %v2229_v14  ;;  %v2216_v62 = vor.u32 1.1754944e-38, %v2215_v54 }
 0x875   : > { %vm2214_vm2 = vcmp.eq.f32.partialorder %v2213_v56, 8.507059e+37 }
 0x876   : > { %v2242_v57 = vmul.f32 %v2241_v42, %v2222_v17  ;;  %v2231_v1 = vmul.f32 %v2230_v55, %v2222_v17 }
 0x878   : > { %v2839_v24 = vpop.eup %2838  ;;  %v2243_v44 = vadd.f32 1.0, %v2242_v57  ;;  %v2232_v20 = vadd.f32 1.1283791, %v2231_v1 }
 0x879   : > { %v2205_v43 = vmul.f32 %v2839_v24, %v2203_v51  ;;  %vm2210_vm14 = vweird.f32 %v2839_v24 }
 0x87a   : > { %2840 = vrcp.f32 %v2243_v44  ;;  %vm2211_vm0 = vmor %vm2209_vm15, %vm2210_vm14  ;;  %v2255_v10 = vand.u32 2147483648, %v2243_v44  ;;  %v2253_v15 = vand.u32 2147483647, %v2243_v44  ;;  %vm2249_vm4 = vweird.f32 %v2243_v44 }
 0x87b   : > { %v2206_v45 = vsub.f32 1.0, %v2205_v43  ;;  %v2233_v17 = vmul.f32 %v2232_v20, %v3805_v12  ;;  %v2795_v12 = vld [vmem:[%s672_s15] ss:$0 sm:$0xff]  ;;  %s3899_s15 = scalar_lea.vmem [#allocation9], %s3265_s19  ;;  %s3057_s19 = smov [#allocation11]  }
 0x87c   : > { %v2256_v19 = vor.u32 1.1754944e-38, %v2255_v10  ;;  %vm2254_vm6 = vcmp.eq.f32.partialorder %v2253_v15, 8.507059e+37  ;;  %s2385_s16 = sshll.u32 %s3057_s19, 4  ;;  %s2386_s16 = int_to_ptr.vmem [resolvable:$true] %s2385_s16 }
 0x87d   : > { %v2207_v52 = vmul.f32 %v2839_v24, %v2206_v45 }
 0x87f   : > { %v2208_v58 = vadd.f32 %v2839_v24, %v2207_v52 }
 0x880   : > { %v2841_v60 = vpop.eup %2840 }
 0x881   : > { %v2212_v61 = vsel %vm2211_vm0, %v2839_v24, %v2208_v58  ;;  %v2245_v2 = vmul.f32 %v2841_v60, %v2243_v44  ;;  %vm2250_vm3 = vweird.f32 %v2841_v60  ;;  %v2796_v58 = vld [vmem:[%s3899_s15] ss:$0 sm:$0xff] }
 0x882   : > { %v2217_v29 = vsel %vm2214_vm2, %v2216_v62, %v2212_v61  ;;  %vm2251_vm5 = vmor %vm2249_vm4, %vm2250_vm3 }
 0x883   : > { %v2246_v8 = vsub.f32 1.0, %v2245_v2  ;;  %v2218_v11 = vmul.f32 %v2217_v29, %v2193_v21 }
 0x885   : > { %v2247_v13 = vmul.f32 %v2841_v60, %v2246_v8  ;;  %v2634_v22 = vclamps-f32 %v2218_v11, 1.0 }
 0x887   : > { %v2248_v16 = vadd.f32 %v2841_v60, %v2247_v13  ;;  %v2261_v0 = vadd.f32 1.0, %v2634_v22 }
 0x889   : > { %v2252_v35 = vsel %vm2251_vm5, %v2841_v60, %v2248_v16  ;;  %v2263_v26 = vmul.f32 %v2261_v0, %v2170_v50 }
 0x88a   : > { %v2257_v28 = vsel %vm2254_vm6, %v2256_v19, %v2252_v35 }
 0x88b   : > { %v2258_v3 = vmul.f32 %v2257_v28, %v2233_v17 }
 0x88d   : > { %v2635_v23 = vclamps-f32 %v2258_v3, 1.0 }
 0x88f   : > { %v2262_v40 = vadd.f32 1.0, %v2635_v23 }
 0x891   : > { %v2264_v27 = vmul.f32 %v2262_v40, %v2171_v25 }
 0x893   : > { %v2265_v5 = vpack.c.bf16 %v2264_v27, %v2263_v26 }
 0x895   : > { %2652 = vmatmul.msk.bf16.vlgmr.msra.gmra.mxu2 %vm2302_vm7, %v2265_v5 }
 0x918   : > { %v2315_v32 = vpop.f32.mrf.mxu2 }
 0x919   : > { %v2316_v33 = vadd.f32 %v2795_v12, %v2315_v32 }
 0x91b   : > { %v2320_v7 = vadd.f32 %v2316_v33, %v3783_v47 }
 0x91d   : > { %v2324_v9 = vsel %vm709_vm1, %v2320_v7, 0.0 }
 0x91e   : > { %2325 = vadd.xlane.f32.xlu0 %v2324_v9 }
 0x920   : > { %v2317_v63 = vpop.f32.mrf.mxu2 }
 0x921   : > { %v2318_v6 = vadd.f32 %v2795_v12, %v2317_v63 }
 0x923   : > { %v2321_v18 = vadd.f32 %v2318_v6, %v3785_v48 }
 0x925   : > { %v2327_v30 = vsel %vm709_vm1, %v2321_v18, 0.0 }
 0x926   : > { %2328 = vadd.xlane.f32.xlu2 %v2327_v30 }
 0x991   : > { %v2326_v34 = vpop.xlane.xlu0 %2325 }
 0x992   : > { %v2330_v36 = vmul.f32 %v2326_v34, %v3763_v46 }
 0x994   : > { %v2332_v51 = vsub.f32 %v2320_v7, %v2330_v36 }
 0x996   : > { %v2334_v53 = vmul.f32 %v2332_v51, %v2332_v51 }
 0x998   : > { %v2336_v37 = vsel %vm709_vm1, %v2334_v53, 0.0 }
 0x999   : > { %v2329_v38 = vpop.xlane.xlu2 %2328  ;;  %2337 = vadd.xlane.f32.xlu0 %v2336_v37 }
 0x99a   : > { %v2331_v47 = vmul.f32 %v2329_v38, %v3763_v46 }
 0x99c   : > { %v2333_v39 = vsub.f32 %v2321_v18, %v2331_v47 }
 0x99e   : > { %v2335_v41 = vmul.f32 %v2333_v39, %v2333_v39 }
 0x9a0   : > { %v2339_v31 = vsel %vm709_vm1, %v2335_v41, 0.0 }
 0x9a1   : > { %2340 = vadd.xlane.f32.xlu2 %v2339_v31 }
 0xa0c   : > { %v2338_v48 = vpop.xlane.xlu0 %2337 }
 0xa0d   : > { %v2342_v42 = vmul.f32 %v2338_v48, %v3763_v46 }
 0xa0f   : > { %v2344_v57 = vadd.f32 1e-05, %v2342_v42 }
 0xa11   : > { %2842 = vrsqrt.f32 %v2344_v57  ;;  %vm2352_vm9 = vweird.f32 %v2344_v57 }
 0xa14   : > { %v2341_v24 = vpop.xlane.xlu2 %2340 }
 0xa15   : > { %v2343_v4 = vmul.f32 %v2341_v24, %v3763_v46  ;;  %v2797_v46 = vld [vmem:[%s675_s21] ss:$0 sm:$0xff]  ;;  %s2387_s21 = sshll.u32 %s3901_s10, 4  ;;  %s2388_s21 = int_to_ptr.hbm [resolvable:$true] %s2387_s21 }
 0xa17   : > { %v2843_v43 = vpop.eup %2842  ;;  %v2345_v14 = vadd.f32 1e-05, %v2343_v4 }
 0xa18   : > { %v2347_v44 = vmul.f32 %v2843_v43, %v2344_v57  ;;  %vm2353_vm8 = vweird.f32 %v2843_v43 }
 0xa19   : > { %2844 = vrsqrt.f32 %v2345_v14  ;;  %vm2354_vm10 = vmor %vm2352_vm9, %vm2353_vm8  ;;  %vm2362_vm12 = vweird.f32 %v2345_v14 }
 0xa1a   : > { %v2348_v45 = vmul.f32 %v2843_v43, %v2347_v44 }
 0xa1c   : > { %v2349_v49 = vmul.f32 0.5, %v2348_v45 }
 0xa1e   : > { %v2350_v52 = vsub.f32 1.5, %v2349_v49 }
 0xa1f   : > { %v2845_v54 = vpop.eup %2844 }
 0xa20   : > { %v2351_v55 = vmul.f32 %v2843_v43, %v2350_v52  ;;  %v2357_v56 = vmul.f32 %v2845_v54, %v2345_v14  ;;  %vm2363_vm11 = vweird.f32 %v2845_v54 }
 0xa21   : > { %vm2364_vm13 = vmor %vm2362_vm12, %vm2363_vm11 }
 0xa22   : > { %v2355_v59 = vsel %vm2354_vm10, %v2843_v43, %v2351_v55  ;;  %v2358_v60 = vmul.f32 %v2845_v54, %v2357_v56 }
 0xa23   : > { %v2366_v61 = vmul.f32 %v2355_v59, %v2332_v51 }
 0xa24   : > { %v2359_v62 = vmul.f32 0.5, %v2358_v60 }
 0xa25   : > { %v2371_v1 = vmul.f32 %v2796_v58, %v2366_v61 }
 0xa26   : > { %v2360_v2 = vsub.f32 1.5, %v2359_v62 }
 0xa27   : > { %v2376_v29 = vadd.f32 %v2797_v46, %v2371_v1 }
 0xa28   : > { %v2361_v21 = vmul.f32 %v2845_v54, %v2360_v2 }
 0xa29   : > { %2378 = vst.msk [vmem:[#allocation11] sm:$0xff] %vm709_vm1, %v2376_v29 }
 0xa2a   : > { %v2365_v8 = vsel %vm2364_vm13, %v2845_v54, %v2361_v21 }
 0xa2b   : > { %v2367_v20 = vmul.f32 %v2365_v8, %v2333_v39 }
 0xa2d   : > { %v2372_v10 = vmul.f32 %v2796_v58, %v2367_v20 }
 0xa2f   : > { %v2377_v11 = vadd.f32 %v2797_v46, %v2372_v10 }
 0xa31   : > { %2379 = vst.msk [vmem:[#allocation11 + $0x8] sm:$0xff] %vm709_vm1, %v2377_v11 }
 0xa32   : > { %2680 = dma.vmem_to_hbm [thread:$0]  (%p2700_p8), %s2386_s16, 256, %s2388_s21, [#allocation5], %s3058_s29, %s3058_s29, %s3059_s17  }
 0xa33   : > { %3025 = dma.done.wait (%p2700_p8), [#allocation5], 256  }
 0xa34   : > { %3027 = vsyncadd (%p2700_p8), [#allocation5], 4294967040 }
 0xa35 PF: > { %s3902_s28 = sld [smem:[#allocation17_spill]]  ;;  %s3905_s25 = smov %s3034_s26 }
 0xa36   : > { %s3903_s18 = sld [smem:[#allocation16_spill]] }
 0xa37   : > { %s3904_s27 = sld [smem:[#allocation18_spill]] }
 0xa3b   : > { %p28_p10 = scmp.ge.s32.totalorder %s3902_s28, 4  }
 0xa3c   : > { %s3906_s26 = smov %s3903_s18 }
 0xa3d   :  { %30 = sbr.rel (!%p28_p10) target bundleno = 15 (0xf), region = 170 }
 0xa42   :  { %2404 = vsyncpa [#allocation4], 1 }
 0xa43   :  { %2406 = vsyncpa [#allocation4 + $0x1], 1 }
 0xa44   :  { %2407 = vsyncpa [#allocation7], 1 }
 0xa45   :  { %2409 = vsyncpa [#allocation7 + $0x1], 1 }
 0xa46   :  { %2410 = vsyncpa [#allocation10], 1 }
 0xa47   :  { %2412 = vsyncpa [#allocation10 + $0x1], 1 }
 0xa48   :  { %2413 = vsyncpa [#allocation5], 1 }
 0xa49   :  { %2415 = vsyncpa [#allocation5 + $0x1], 1 }

</bundles_post_ra>
